<compile_context>
chip_gen: v5e
topology: v5e:2x2
jax: 0.10.0
libtpu: 0.0.40
codegen_flags: <defaults>
</compile_context>

<pallas_src>
import functools
import math

import jax
import jax.numpy as jnp
from jax.experimental import pallas as pl
from jax.experimental.pallas import tpu as pltpu


# ----------------------------------------------------------------------------- config


class SAUTEConfig:
    def __init__(self,
                 vocab_size=100,
                 hidden_size=32,
                 num_attention_heads=2,
                 intermediate_size=64,
                 num_hidden_layers=2,
                 max_position_embeddings=16,
                 max_edus_per_dialog=16,
                 max_speakers=4,
                 hidden_dropout_prob=0.1):
        self.vocab_size = vocab_size
        self.hidden_size = hidden_size
        self.num_attention_heads = num_attention_heads
        self.intermediate_size = intermediate_size
        self.num_hidden_layers = num_hidden_layers
        self.max_position_embeddings = max_position_embeddings
        self.max_edus_per_dialog = max_edus_per_dialog
        self.max_speakers = max_speakers
        self.hidden_dropout_prob = hidden_dropout_prob


# ----------------------------------------------------------------------- kernel helpers


_GELU_C = math.sqrt(2.0 / math.pi)


def _gelu_tanh(x):
    # TODO(synk): tanh-form GELU (~3e-4 max abs dev from nn.GELU's exact erf); tanh runs on
    # the EUP slot instead of ~10 dependent VALU ops per element for the erf polynomial.
    return 0.5 * x * (1.0 + jnp.tanh(_GELU_C * (x + 0.044715 * x * x * x)))


def _layer_norm(x, gamma, beta, eps=1e-5):
    # One-pass statistics: sum and sum-of-squares are independent XLU reductions.
    mu = jnp.mean(x, axis=-1, keepdims=True)
    ms = jnp.mean(x * x, axis=-1, keepdims=True)
    var = ms - mu * mu
    return (x - mu) * jax.lax.rsqrt(var + eps) * gamma + beta


def _mm(a, b):
    return jax.lax.dot_general(a, b, (((1,), (0,)), ((), ())),
                               preferred_element_type=jnp.float32)


# ----------------------------------------------- Pallas fused multi-layer transformer encoder
#
# One grid step processes a block of R full (S, H) sequences through ALL encoder layers.
# Weights are stacked on a leading layer axis and passed as full-array (VMEM-resident) blocks.
# hpack rows per layer: [bo, b2, ln1_gamma, ln1_beta, ln2_gamma, ln2_beta, pad, pad]


def _encoder_kernel(x_ref, wqkv_ref, bqkv_ref, wo_ref, w1_ref, b1_ref, w2_ref,
                    hpack_ref, o_ref, *, n_heads, n_layers):
    R, S, H = x_ref.shape
    hd = H // n_heads
    scale = 1.0 / math.sqrt(hd)
    M = R * S

    # (R, S, H) -> (R*S, H): leading-dim merge only (S multiple of 8), layout preserving.
    y = x_ref[...].astype(jnp.float32).reshape(M, H)

    for layer in range(n_layers):                       # static unroll over layers
        wqkv = wqkv_ref[layer]                          # (H, 3H)  bf16
        bqkv = bqkv_ref[layer]                          # (1, 3H)  f32
        w1 = w1_ref[layer]                              # (H, F)   bf16
        b1 = b1_ref[layer]                              # (1, F)   f32
        w2 = w2_ref[layer]                              # (F, H)   bf16
        hp = hpack_ref[layer]                           # (8, H)   f32
        bo, b2 = hp[0:1, :], hp[1:2, :]
        g1, beta1 = hp[2:3, :], hp[3:4, :]
        g2, beta2 = hp[4:5, :], hp[5:6, :]

        # fused QKV projection: one (M, H) @ (H, 3H) bf16 MXU push, f32 accumulate
        qkv = _mm(y.astype(jnp.bfloat16), wqkv) + bqkv  # (M, 3H) f32
        qkv3 = qkv.reshape(R, S, 3 * H)                 # split leading dim only

        # multi-head self-attention (non-causal, scale 1/sqrt(head_dim)), batched over rows.
        # Each head's context is projected by its own wo slab and accumulated -> no lane
        # concat of head outputs; mathematically identical to concat + single (H,H) matmul.
        attn = None
        for h in range(n_heads):                        # static, tiny head count
            qh = qkv3[..., h * hd:(h + 1) * hd].astype(jnp.bfloat16)
            kh = qkv3[..., H + h * hd:H + (h + 1) * hd].astype(jnp.bfloat16)
            vh = qkv3[..., 2 * H + h * hd:2 * H + (h + 1) * hd]
            s = jnp.einsum('rqd,rkd->rqk', qh, kh,
                           preferred_element_type=jnp.float32) * scale
            s = s - jnp.max(s, axis=-1, keepdims=True)
            p = jnp.exp(s)
            # EUP reciprocal instead of a VALU divide
            p = p * pl.reciprocal(jnp.sum(p, axis=-1, keepdims=True), approx=True)
            ctx = jnp.einsum('rqk,rkd->rqd', p.astype(jnp.bfloat16),
                             vh.astype(jnp.bfloat16),
                             preferred_element_type=jnp.float32)
            proj = _mm(ctx.reshape(M, hd).astype(jnp.bfloat16), wo_ref[layer, h])
            attn = proj if attn is None else attn + proj
        attn = attn + bo

        # post-norm residual blocks (f32)
        y = _layer_norm(y + attn, g1, beta1)
        h1 = _gelu_tanh(_mm(y.astype(jnp.bfloat16), w1) + b1)
        y = _layer_norm(y + _mm(h1.astype(jnp.bfloat16), w2) + b2, g2, beta2)

    o_ref[...] = y.reshape(R, S, H).astype(o_ref.dtype)


def _full_spec(shape):
    # Constant-index (weight) inputs; block == full array.
    # TODO(synk): could mark these pipeline_mode=pl.Buffered(1) (weights never change across
    # grid steps); skipped as the VMEM saving is <0.2 MiB at these shapes.
    zeros = (0,) * len(shape)
    return pl.BlockSpec(shape, lambda i, _z=zeros: _z)


def _cdiv(a, b):
    return -(-a // b)


_MAX_BLOCK_ROWS = 128   # cap on sequences per grid step
_MIN_GRID_STEPS = 2     # >=2 steps: lets v7x's two TensorCores both get work + DMA overlap


@functools.partial(jax.jit, static_argnames=("n_heads", "block_rows"))
def _encoder_pallas(x, wqkv, bqkv, wo, w1, b1, w2, hpack, *, n_heads, block_rows):
    N, S, H = x.shape
    n_layers = wqkv.shape[0]
    kernel = functools.partial(_encoder_kernel, n_heads=n_heads, n_layers=n_layers)
    weights = (wqkv, bqkv, wo, w1, b1, w2, hpack)
    return pl.pallas_call(
        kernel,
        out_shape=jax.ShapeDtypeStruct((N, S, H), jnp.float32),
        grid=(N // block_rows,),
        in_specs=[pl.BlockSpec((block_rows, S, H), lambda i: (i, 0, 0))]
                 + [_full_spec(w.shape) for w in weights],
        out_specs=pl.BlockSpec((block_rows, S, H), lambda i: (i, 0, 0)),
        compiler_params=pltpu.CompilerParams(dimension_semantics=("parallel",)),
    )(x, *weights)


def apply_encoder(x, enc):
    """Run a fused (multi-layer) FlashTransformer encoder. x: (N, S, H) -> (N, S, H)."""
    N, S, H = x.shape
    block_rows = min(_MAX_BLOCK_ROWS, max(1, _cdiv(N, _MIN_GRID_STEPS)))
    n_steps = max(_MIN_GRID_STEPS, _cdiv(N, block_rows))
    padded = n_steps * block_rows
    if padded != N:
        x = jnp.concatenate([x, jnp.zeros((padded - N, S, H), x.dtype)], axis=0)
    y = _encoder_pallas(x, enc["wqkv"], enc["bqkv"], enc["wo"], enc["w1"],
                        enc["b1"], enc["w2"], enc["hpack"],
                        n_heads=enc["n_heads"], block_rows=block_rows)
    return y[:N] if padded != N else y


# ------------------------------------------------------------------------- parameters


def _init_encoder(key, H, F, n_heads, n_layers, scale=0.02):
    hd = H // n_heads
    lkeys = jax.random.split(key, n_layers)
    wqkv, bqkv, wo, w1, b1, w2, hpack = ([] for _ in range(7))
    for lk in lkeys:
        k = jax.random.split(lk, 8)
        wqkv.append(jax.random.normal(k[0], (H, 3 * H), jnp.float32) * scale)
        bqkv.append(jax.random.normal(k[1], (1, 3 * H), jnp.float32) * scale)
        # out projection pre-split head-major: (n_heads, hd, H)
        wo.append((jax.random.normal(k[2], (H, H), jnp.float32) * scale).reshape(n_heads, hd, H))
        bo = jax.random.normal(k[3], (1, H), jnp.float32) * scale
        w1.append(jax.random.normal(k[4], (H, F), jnp.float32) * scale)
        b1.append(jax.random.normal(k[5], (1, F), jnp.float32) * scale)
        w2.append(jax.random.normal(k[6], (F, H), jnp.float32) * scale)
        b2 = jax.random.normal(k[7], (1, H), jnp.float32) * scale
        hpack.append(jnp.concatenate([
            bo, b2,
            jnp.ones((1, H), jnp.float32), jnp.zeros((1, H), jnp.float32),   # LN1 gamma/beta
            jnp.ones((1, H), jnp.float32), jnp.zeros((1, H), jnp.float32),   # LN2 gamma/beta
            jnp.zeros((2, H), jnp.float32),                                  # pad to 8 rows
        ], axis=0))
    # Matmul weights stored bf16 (MXU-native operands); biases / LN params stay f32.
    return {
        "n_heads": int(n_heads),
        "wqkv": jnp.stack(wqkv).astype(jnp.bfloat16),
        "bqkv": jnp.stack(bqkv),
        "wo": jnp.stack(wo).astype(jnp.bfloat16),
        "w1": jnp.stack(w1).astype(jnp.bfloat16),
        "b1": jnp.stack(b1),
        "w2": jnp.stack(w2).astype(jnp.bfloat16),
        "hpack": jnp.stack(hpack),
    }


def init_params(key, cfg):
    H, F = cfg.hidden_size, cfg.intermediate_size
    keys = iter(jax.random.split(key, 32))
    nk = lambda: next(keys)
    s = 0.02
    params = {
        "token_emb": jax.random.normal(nk(), (cfg.vocab_size, H), jnp.float32) * s,
        "token_pe": jax.random.normal(nk(), (cfg.max_position_embeddings, H), jnp.float32) * s,
        "edu_pe": jax.random.normal(nk(), (cfg.max_edus_per_dialog, H), jnp.float32) * s,
        "speaker_emb": jax.random.normal(nk(), (cfg.max_speakers, H), jnp.float32) * s,
        "speaker_gate": _init_encoder(nk(), H, F, cfg.num_attention_heads, 1),
        # context_gate exists in the module but is never used in forward; kept for parity.
        "context_gate": _init_encoder(nk(), H, F, cfg.num_attention_heads, 1),
        "main_gate": _init_encoder(nk(), H, F, cfg.num_attention_heads,
                                   cfg.num_hidden_layers),
        "update_w": jax.random.normal(nk(), (H, 1), jnp.float32) * s,
        "update_b": jnp.array([1.5], jnp.float32),
        "pool_W": jax.random.normal(nk(), (H, H), jnp.float32) * s,
        "pool_b": jax.random.normal(nk(), (H,), jnp.float32) * s,
        "pool_v": jax.random.normal(nk(), (H, 1), jnp.float32) * 0.1,
        "gru_w_ih": jax.random.normal(nk(), (H, 3 * H), jnp.float32) * s,
        "gru_w_hh": jax.random.normal(nk(), (H, 3 * H), jnp.float32) * s,
        "gru_b_ih": jax.random.normal(nk(), (3 * H,), jnp.float32) * s,
        "gru_b_hh": jax.random.normal(nk(), (3 * H,), jnp.float32) * s,
    }
    return params


def _gru_cell(p, x, h):
    # torch.nn.GRUCell semantics (gate order r, z, n)
    H = h.shape[-1]
    gi = x @ p["gru_w_ih"] + p["gru_b_ih"]
    gh = h @ p["gru_w_hh"] + p["gru_b_hh"]
    i_r, i_z, i_n = gi[:H], gi[H:2 * H], gi[2 * H:]
    h_r, h_z, h_n = gh[:H], gh[H:2 * H], gh[2 * H:]
    r = jax.nn.sigmoid(i_r + h_r)
    z = jax.nn.sigmoid(i_z + h_z)
    n = jnp.tanh(i_n + r * h_n)
    return (1.0 - z) * n + z * h


# --------------------------------------------------------------------------- forward


def discourse_transformer_forward(params, cfg, input_ids, attention_mask, speaker_names):
    update_threshold = 0.5
    B, T, L = input_ids.shape
    H = cfg.hidden_size

    # host-side speaker name -> id mapping (mirrors the python dict loop in the module);
    # ids kept as host ints so no device->host sync is ever needed for indexing.
    spk_maps, spk_ids_host = [], []
    for dialog in speaker_names:
        m = {n: i for i, n in enumerate(sorted(set(dialog)))}
        spk_maps.append(m)
        spk_ids_host.append([m[n] for n in dialog])
    speaker_ids = jnp.array(spk_ids_host, dtype=jnp.int32)              # (B, T)

    x = params["token_emb"][input_ids]                                  # (B, T, L, H)
    x = x + params["token_pe"][jnp.arange(L)]                           # + token PE
    selective_x = x + params["speaker_emb"][speaker_ids][:, :, None, :]  # + speaker emb
    # NB: the torch module never passes a key-padding mask to either encoder, so none is
    # applied here either (attention_mask is only used for the pooling step below).

    # --- speaker gate hoisted out of the T loop: ONE row-batched Pallas call -----------
    speaker_logits_all = apply_encoder(
        selective_x.reshape(B * T, L, H), params["speaker_gate"]).reshape(B, T, L, H)

    # --- main gate batched over all (query l, context t) pairs: ONE Pallas call --------
    # Rows with t > l are computed and discarded (each (2L,H) sequence is independent, so
    # padding never contaminates real rows, and the single static shape means one compile).
    # TODO(synk): a scalar-prefetch row map could skip the discarded t>l rows (~50% FLOPs).
    ctx_part = jnp.broadcast_to(selective_x[:, None], (B, T, T, L, H))     # [b,l,t]=x[b,t]
    qry_part = jnp.broadcast_to(selective_x[:, :, None], (B, T, T, L, H))  # [b,l,t]=x[b,l]
    relative_x = jnp.concatenate([ctx_part, qry_part], axis=3)             # (B,T,T,2L,H)
    rel_first = jnp.clip(jnp.arange(T, dtype=jnp.int32)[:, None]
                         - jnp.arange(T, dtype=jnp.int32)[None, :], 0)     # (T_l, T_t)
    rel_ids = jnp.concatenate(
        [jnp.broadcast_to(rel_first[None, :, :, None], (B, T, T, L)),
         jnp.zeros((B, T, T, L), jnp.int32)], axis=3)                      # (B,T,T,2L)
    relative_x = relative_x + params["edu_pe"][rel_ids]
    main_out = apply_encoder(relative_x.reshape(B * T * T, 2 * L, H),
                             params["main_gate"])                          # all layers fused
    main_out = main_out.reshape(B, T, T, 2 * L, H)[:, :, :, L:]            # (B, l, t, L, H)

    speaker_memories = [jnp.zeros((len(m), H), jnp.float32) for m in spk_maps]
    output = []
    flop_penalty = 0.0

    for l in range(T):
        speaker_logits = speaker_logits_all[:, l]                       # (B, L, H)

        speaker_probs_list = []
        for b, mem in enumerate(speaker_memories):
            sim = jnp.max(mem @ speaker_logits[b].T, axis=1)            # (n_spk,)
            probs = jax.nn.softmax(sim, axis=0)
            speaker_probs_list.append(probs[speaker_ids[b, :l + 1]])    # (l+1,)
        speaker_probs = jnp.stack(speaker_probs_list)                   # (B, l+1)

        last_probs = speaker_probs[:, -1]
        entropy = -(last_probs * jnp.log(last_probs + 1e-12)).sum(-1)
        flop_penalty = flop_penalty + entropy.mean()

        x_i = main_out[:, l, :l + 1]                                    # (B, l+1, L, H)
        x_i = (x_i * speaker_probs[:, :, None, None]).mean(axis=1)      # (B, L, H)
        output.append(x_i[:, None])

        # attention pooling over tokens
        scores = jnp.tanh(x_i @ params["pool_W"] + params["pool_b"]) @ params["pool_v"]
        scores = scores[..., 0]                                         # (B, L)
        mask_cur = attention_mask[:, l].astype(bool)
        scores = jnp.where(mask_cur, scores, -10000.0)
        alpha = jax.nn.softmax(scores, axis=-1)
        edu_vec = (alpha[..., None] * x_i).sum(axis=1)                  # (B, H)

        # speaker-memory update: device-side masked GRU (no host sync / no .item()),
        # equivalent to the torch threshold branch.
        for b in range(B):
            mem = speaker_memories[b]
            sid = spk_ids_host[b][l]                                    # host int, no sync
            p_spk = speaker_probs[b, l]
            p_cnt = jax.nn.sigmoid(edu_vec[b] @ params["update_w"] + params["update_b"])[0]
            p_update = p_spk * p_cnt
            new_h = _gru_cell(params, edu_vec[b], mem[sid])
            upd = jnp.where(p_update >= update_threshold, new_h, mem[sid])
            speaker_memories[b] = mem.at[sid].set(upd)

    output = jnp.concatenate(output, axis=1)                            # (B, T, L, H)
    flop_penalty = flop_penalty / T
    # TODO(synk): the per-EDU glue ops (speaker probs, pooling, GRU) still run as eager XLA
    # ops with per-l shapes; they could be jitted with fixed-shape masking for further wins.
    return output, flop_penalty


# ------------------------------------------------------------------------------ main


if __name__ == "__main__":
    cfg = SAUTEConfig(vocab_size=100, hidden_size=32, num_attention_heads=2,
                      intermediate_size=64, num_hidden_layers=2,
                      max_position_embeddings=16, max_edus_per_dialog=16,
                      max_speakers=4)

    key = jax.random.PRNGKey(0)
    pkey, dkey = jax.random.split(key)
    params = init_params(pkey, cfg)

    B, T, L = 2, 3, 8
    input_ids = jax.random.randint(dkey, (B, T, L), 0, cfg.vocab_size, dtype=jnp.int32)
    attention_mask = jnp.ones((B, T, L), jnp.int32).at[1, :, -1].set(0)
    speaker_names = [["alice", "alice", "alice"], ["carol", "dave", "carol"]]

    output, flop_penalty = discourse_transformer_forward(
        params, cfg, input_ids, attention_mask, speaker_names)
    jax.block_until_ready(output)
    jax.block_until_ready(flop_penalty)

    assert output.shape == (B, T, L, cfg.hidden_size)
    assert output.dtype == jnp.float32
    print("KERNEL_OK")
</pallas_src>

<mosaic_0001>
module attributes {stable_mosaic.version = 11 : i64} {
  func.func @_encoder_kernel(%arg0: i32, %arg1: memref<3x8x32xf32, #tpu.memory_space<vmem>>, %arg2: memref<1x32x96xbf16, #tpu.memory_space<vmem>>, %arg3: memref<1x1x96xf32, #tpu.memory_space<vmem>>, %arg4: memref<1x2x16x32xbf16, #tpu.memory_space<vmem>>, %arg5: memref<1x32x64xbf16, #tpu.memory_space<vmem>>, %arg6: memref<1x1x64xf32, #tpu.memory_space<vmem>>, %arg7: memref<1x64x32xbf16, #tpu.memory_space<vmem>>, %arg8: memref<1x8x32xf32, #tpu.memory_space<vmem>>, %arg9: memref<3x8x32xf32, #tpu.memory_space<vmem>>) attributes {dimension_semantics = [#tpu.dimension_semantics<parallel>], iteration_bounds = array<i64: 2>, scalar_prefetch = 0 : i64, scratch_operands = 0 : i64, tpu.core_type = #tpu.core_type<tc>, window_params = [{transform_indices = @transform_0, window_bounds = array<i64: 3, 8, 32>}, {pipeline_mode = #tpu.pipeline_mode<synchronous>, transform_indices = @transform_1, window_bounds = array<i64: 1, 32, 96>}, {pipeline_mode = #tpu.pipeline_mode<synchronous>, transform_indices = @transform_2, window_bounds = array<i64: 1, 1, 96>}, {pipeline_mode = #tpu.pipeline_mode<synchronous>, transform_indices = @transform_3, window_bounds = array<i64: 1, 2, 16, 32>}, {pipeline_mode = #tpu.pipeline_mode<synchronous>, transform_indices = @transform_4, window_bounds = array<i64: 1, 32, 64>}, {pipeline_mode = #tpu.pipeline_mode<synchronous>, transform_indices = @transform_5, window_bounds = array<i64: 1, 1, 64>}, {pipeline_mode = #tpu.pipeline_mode<synchronous>, transform_indices = @transform_6, window_bounds = array<i64: 1, 64, 32>}, {pipeline_mode = #tpu.pipeline_mode<synchronous>, transform_indices = @transform_7, window_bounds = array<i64: 1, 8, 32>}, {transform_indices = @transform_8, window_bounds = array<i64: 3, 8, 32>}]} {
    %c0 = arith.constant 0 : index
    %c0_0 = arith.constant 0 : index
    %c0_1 = arith.constant 0 : index
    %0 = vector.load %arg1[%c0, %c0_0, %c0_1] : memref<3x8x32xf32, #tpu.memory_space<vmem>>, vector<3x8x32xf32>
    %1 = vector.shape_cast %0 : vector<3x8x32xf32> to vector<24x32xf32>
    %c0_2 = arith.constant 0 : index
    %c0_3 = arith.constant 0 : index
    %c0_4 = arith.constant 0 : index
    %2 = vector.load %arg2[%c0_2, %c0_3, %c0_4] : memref<1x32x96xbf16, #tpu.memory_space<vmem>>, vector<1x32x96xbf16>
    %3 = vector.shape_cast %2 : vector<1x32x96xbf16> to vector<32x96xbf16>
    %c0_5 = arith.constant 0 : index
    %c0_6 = arith.constant 0 : index
    %c0_7 = arith.constant 0 : index
    %4 = vector.load %arg3[%c0_5, %c0_6, %c0_7] : memref<1x1x96xf32, #tpu.memory_space<vmem>>, vector<1x1x96xf32>
    %5 = vector.shape_cast %4 : vector<1x1x96xf32> to vector<1x96xf32>
    %c0_8 = arith.constant 0 : index
    %c0_9 = arith.constant 0 : index
    %c0_10 = arith.constant 0 : index
    %6 = vector.load %arg5[%c0_8, %c0_9, %c0_10] : memref<1x32x64xbf16, #tpu.memory_space<vmem>>, vector<1x32x64xbf16>
    %7 = vector.shape_cast %6 : vector<1x32x64xbf16> to vector<32x64xbf16>
    %c0_11 = arith.constant 0 : index
    %c0_12 = arith.constant 0 : index
    %c0_13 = arith.constant 0 : index
    %8 = vector.load %arg6[%c0_11, %c0_12, %c0_13] : memref<1x1x64xf32, #tpu.memory_space<vmem>>, vector<1x1x64xf32>
    %9 = vector.shape_cast %8 : vector<1x1x64xf32> to vector<1x64xf32>
    %c0_14 = arith.constant 0 : index
    %c0_15 = arith.constant 0 : index
    %c0_16 = arith.constant 0 : index
    %10 = vector.load %arg7[%c0_14, %c0_15, %c0_16] : memref<1x64x32xbf16, #tpu.memory_space<vmem>>, vector<1x64x32xbf16>
    %11 = vector.shape_cast %10 : vector<1x64x32xbf16> to vector<64x32xbf16>
    %c0_17 = arith.constant 0 : index
    %c0_18 = arith.constant 0 : index
    %c0_19 = arith.constant 0 : index
    %12 = vector.load %arg8[%c0_17, %c0_18, %c0_19] : memref<1x8x32xf32, #tpu.memory_space<vmem>>, vector<1x8x32xf32>
    %13 = vector.shape_cast %12 : vector<1x8x32xf32> to vector<8x32xf32>
    %14 = vector.extract_strided_slice %13 {offsets = [0, 0], sizes = [1, 32], strides = [1, 1]} : vector<8x32xf32> to vector<1x32xf32>
    %15 = vector.extract_strided_slice %13 {offsets = [1, 0], sizes = [1, 32], strides = [1, 1]} : vector<8x32xf32> to vector<1x32xf32>
    %16 = vector.extract_strided_slice %13 {offsets = [2, 0], sizes = [1, 32], strides = [1, 1]} : vector<8x32xf32> to vector<1x32xf32>
    %17 = vector.extract_strided_slice %13 {offsets = [3, 0], sizes = [1, 32], strides = [1, 1]} : vector<8x32xf32> to vector<1x32xf32>
    %18 = vector.extract_strided_slice %13 {offsets = [4, 0], sizes = [1, 32], strides = [1, 1]} : vector<8x32xf32> to vector<1x32xf32>
    %19 = vector.extract_strided_slice %13 {offsets = [5, 0], sizes = [1, 32], strides = [1, 1]} : vector<8x32xf32> to vector<1x32xf32>
    %20 = arith.truncf %1 : vector<24x32xf32> to vector<24x32xbf16>
    %cst = arith.constant dense<0.000000e+00> : vector<24x96xf32>
    %21 = tpu.matmul %20, %3, %cst {dimension_numbers = #tpu.dot_dimension_numbers<[1], [0], [0], [1], [0, 0, 1, 1], [], []>} : vector<24x32xbf16>, vector<32x96xbf16>, vector<24x96xf32> -> vector<24x96xf32>
    %22 = vector.broadcast %5 : vector<1x96xf32> to vector<24x96xf32>
    %23 = arith.addf %21, %22 : vector<24x96xf32>
    %24 = vector.shape_cast %23 : vector<24x96xf32> to vector<3x8x96xf32>
    %25 = vector.extract_strided_slice %24 {offsets = [0, 0, 0], sizes = [3, 8, 16], strides = [1, 1, 1]} : vector<3x8x96xf32> to vector<3x8x16xf32>
    %26 = arith.truncf %25 : vector<3x8x16xf32> to vector<3x8x16xbf16>
    %27 = vector.extract_strided_slice %24 {offsets = [0, 0, 32], sizes = [3, 8, 16], strides = [1, 1, 1]} : vector<3x8x96xf32> to vector<3x8x16xf32>
    %28 = arith.truncf %27 : vector<3x8x16xf32> to vector<3x8x16xbf16>
    %29 = vector.extract_strided_slice %24 {offsets = [0, 0, 64], sizes = [3, 8, 16], strides = [1, 1, 1]} : vector<3x8x96xf32> to vector<3x8x16xf32>
    "tpu.trace_start"() <{level = 10 : i32, message = "rqd,rkd->rqk"}> : () -> ()
    %cst_20 = arith.constant dense<0.000000e+00> : vector<3x8x8xf32>
    %30 = tpu.matmul %26, %28, %cst_20 {dimension_numbers = #tpu.dot_dimension_numbers<[2], [2], [1], [1], [0, 0, 0, 1, 1, 1], [0], [0]>} : vector<3x8x16xbf16>, vector<3x8x16xbf16>, vector<3x8x8xf32> -> vector<3x8x8xf32>
    "tpu.trace_stop"() : () -> ()
    %cst_21 = arith.constant 2.500000e-01 : f32
    %31 = vector.broadcast %cst_21 : f32 to vector<3x8x8xf32>
    %32 = arith.mulf %30, %31 : vector<3x8x8xf32>
    %cst_22 = arith.constant dense<0xFF800000> : vector<3x8xf32>
    %33 = vector.multi_reduction <maximumf>, %32, %cst_22 [2] : vector<3x8x8xf32> to vector<3x8xf32>
    %34 = vector.shape_cast %33 : vector<3x8xf32> to vector<3x8x1xf32>
    %35 = vector.broadcast %34 : vector<3x8x1xf32> to vector<3x8x8xf32>
    %36 = arith.subf %32, %35 : vector<3x8x8xf32>
    %37 = math.exp %36 : vector<3x8x8xf32>
    %cst_23 = arith.constant dense<0.000000e+00> : vector<3x8xf32>
    %38 = vector.multi_reduction <add>, %37, %cst_23 [2] : vector<3x8x8xf32> to vector<3x8xf32>
    %39 = vector.shape_cast %38 : vector<3x8xf32> to vector<3x8x1xf32>
    %40 = tpu.reciprocal %39 {approx = true} : vector<3x8x1xf32> -> vector<3x8x1xf32>
    %41 = vector.broadcast %40 : vector<3x8x1xf32> to vector<3x8x8xf32>
    %42 = arith.mulf %37, %41 : vector<3x8x8xf32>
    %43 = arith.truncf %42 : vector<3x8x8xf32> to vector<3x8x8xbf16>
    %44 = arith.truncf %29 : vector<3x8x16xf32> to vector<3x8x16xbf16>
    "tpu.trace_start"() <{level = 10 : i32, message = "rqk,rkd->rqd"}> : () -> ()
    %cst_24 = arith.constant dense<0.000000e+00> : vector<3x8x16xf32>
    %45 = tpu.matmul %43, %44, %cst_24 {dimension_numbers = #tpu.dot_dimension_numbers<[2], [1], [1], [2], [0, 0, 0, 1, 1, 2], [0], [0]>} : vector<3x8x8xbf16>, vector<3x8x16xbf16>, vector<3x8x16xf32> -> vector<3x8x16xf32>
    "tpu.trace_stop"() : () -> ()
    %46 = vector.shape_cast %45 : vector<3x8x16xf32> to vector<24x16xf32>
    %47 = arith.truncf %46 : vector<24x16xf32> to vector<24x16xbf16>
    %c0_25 = arith.constant 0 : index
    %c0_26 = arith.constant 0 : index
    %c0_27 = arith.constant 0 : index
    %c0_28 = arith.constant 0 : index
    %48 = vector.load %arg4[%c0_25, %c0_26, %c0_27, %c0_28] : memref<1x2x16x32xbf16, #tpu.memory_space<vmem>>, vector<1x1x16x32xbf16>
    %49 = vector.shape_cast %48 : vector<1x1x16x32xbf16> to vector<16x32xbf16>
    %cst_29 = arith.constant dense<0.000000e+00> : vector<24x32xf32>
    %50 = tpu.matmul %47, %49, %cst_29 {dimension_numbers = #tpu.dot_dimension_numbers<[1], [0], [0], [1], [0, 0, 1, 1], [], []>} : vector<24x16xbf16>, vector<16x32xbf16>, vector<24x32xf32> -> vector<24x32xf32>
    %51 = vector.extract_strided_slice %24 {offsets = [0, 0, 16], sizes = [3, 8, 16], strides = [1, 1, 1]} : vector<3x8x96xf32> to vector<3x8x16xf32>
    %52 = arith.truncf %51 : vector<3x8x16xf32> to vector<3x8x16xbf16>
    %53 = vector.extract_strided_slice %24 {offsets = [0, 0, 48], sizes = [3, 8, 16], strides = [1, 1, 1]} : vector<3x8x96xf32> to vector<3x8x16xf32>
    %54 = arith.truncf %53 : vector<3x8x16xf32> to vector<3x8x16xbf16>
    %55 = vector.extract_strided_slice %24 {offsets = [0, 0, 80], sizes = [3, 8, 16], strides = [1, 1, 1]} : vector<3x8x96xf32> to vector<3x8x16xf32>
    "tpu.trace_start"() <{level = 10 : i32, message = "rqd,rkd->rqk"}> : () -> ()
    %cst_30 = arith.constant dense<0.000000e+00> : vector<3x8x8xf32>
    %56 = tpu.matmul %52, %54, %cst_30 {dimension_numbers = #tpu.dot_dimension_numbers<[2], [2], [1], [1], [0, 0, 0, 1, 1, 1], [0], [0]>} : vector<3x8x16xbf16>, vector<3x8x16xbf16>, vector<3x8x8xf32> -> vector<3x8x8xf32>
    "tpu.trace_stop"() : () -> ()
    %cst_31 = arith.constant 2.500000e-01 : f32
    %57 = vector.broadcast %cst_31 : f32 to vector<3x8x8xf32>
    %58 = arith.mulf %56, %57 : vector<3x8x8xf32>
    %cst_32 = arith.constant dense<0xFF800000> : vector<3x8xf32>
    %59 = vector.multi_reduction <maximumf>, %58, %cst_32 [2] : vector<3x8x8xf32> to vector<3x8xf32>
    %60 = vector.shape_cast %59 : vector<3x8xf32> to vector<3x8x1xf32>
    %61 = vector.broadcast %60 : vector<3x8x1xf32> to vector<3x8x8xf32>
    %62 = arith.subf %58, %61 : vector<3x8x8xf32>
    %63 = math.exp %62 : vector<3x8x8xf32>
    %cst_33 = arith.constant dense<0.000000e+00> : vector<3x8xf32>
    %64 = vector.multi_reduction <add>, %63, %cst_33 [2] : vector<3x8x8xf32> to vector<3x8xf32>
    %65 = vector.shape_cast %64 : vector<3x8xf32> to vector<3x8x1xf32>
    %66 = tpu.reciprocal %65 {approx = true} : vector<3x8x1xf32> -> vector<3x8x1xf32>
    %67 = vector.broadcast %66 : vector<3x8x1xf32> to vector<3x8x8xf32>
    %68 = arith.mulf %63, %67 : vector<3x8x8xf32>
    %69 = arith.truncf %68 : vector<3x8x8xf32> to vector<3x8x8xbf16>
    %70 = arith.truncf %55 : vector<3x8x16xf32> to vector<3x8x16xbf16>
    "tpu.trace_start"() <{level = 10 : i32, message = "rqk,rkd->rqd"}> : () -> ()
    %cst_34 = arith.constant dense<0.000000e+00> : vector<3x8x16xf32>
    %71 = tpu.matmul %69, %70, %cst_34 {dimension_numbers = #tpu.dot_dimension_numbers<[2], [1], [1], [2], [0, 0, 0, 1, 1, 2], [0], [0]>} : vector<3x8x8xbf16>, vector<3x8x16xbf16>, vector<3x8x16xf32> -> vector<3x8x16xf32>
    "tpu.trace_stop"() : () -> ()
    %72 = vector.shape_cast %71 : vector<3x8x16xf32> to vector<24x16xf32>
    %73 = arith.truncf %72 : vector<24x16xf32> to vector<24x16xbf16>
    %c0_35 = arith.constant 0 : index
    %c1 = arith.constant 1 : index
    %c0_36 = arith.constant 0 : index
    %c0_37 = arith.constant 0 : index
    %74 = vector.load %arg4[%c0_35, %c1, %c0_36, %c0_37] : memref<1x2x16x32xbf16, #tpu.memory_space<vmem>>, vector<1x1x16x32xbf16>
    %75 = vector.shape_cast %74 : vector<1x1x16x32xbf16> to vector<16x32xbf16>
    %cst_38 = arith.constant dense<0.000000e+00> : vector<24x32xf32>
    %76 = tpu.matmul %73, %75, %cst_38 {dimension_numbers = #tpu.dot_dimension_numbers<[1], [0], [0], [1], [0, 0, 1, 1], [], []>} : vector<24x16xbf16>, vector<16x32xbf16>, vector<24x32xf32> -> vector<24x32xf32>
    %77 = arith.addf %50, %76 : vector<24x32xf32>
    %78 = vector.broadcast %14 : vector<1x32xf32> to vector<24x32xf32>
    %79 = arith.addf %77, %78 : vector<24x32xf32>
    %80 = arith.addf %1, %79 : vector<24x32xf32>
    %cst_39 = arith.constant dense<0.000000e+00> : vector<24xf32>
    %81 = vector.multi_reduction <add>, %80, %cst_39 [1] : vector<24x32xf32> to vector<24xf32>
    %82 = vector.shape_cast %81 : vector<24xf32> to vector<24x1xf32>
    %cst_40 = arith.constant 3.200000e+01 : f32
    %83 = vector.broadcast %cst_40 : f32 to vector<24x1xf32>
    %84 = arith.divf %82, %83 : vector<24x1xf32>
    %85 = arith.mulf %80, %80 : vector<24x32xf32>
    %cst_41 = arith.constant dense<0.000000e+00> : vector<24xf32>
    %86 = vector.multi_reduction <add>, %85, %cst_41 [1] : vector<24x32xf32> to vector<24xf32>
    %87 = vector.shape_cast %86 : vector<24xf32> to vector<24x1xf32>
    %cst_42 = arith.constant 3.200000e+01 : f32
    %88 = vector.broadcast %cst_42 : f32 to vector<24x1xf32>
    %89 = arith.divf %87, %88 : vector<24x1xf32>
    %90 = arith.mulf %84, %84 : vector<24x1xf32>
    %91 = arith.subf %89, %90 : vector<24x1xf32>
    %92 = vector.broadcast %84 : vector<24x1xf32> to vector<24x32xf32>
    %93 = arith.subf %80, %92 : vector<24x32xf32>
    %cst_43 = arith.constant 9.99999974E-6 : f32
    %94 = vector.broadcast %cst_43 : f32 to vector<24x1xf32>
    %95 = arith.addf %91, %94 : vector<24x1xf32>
    %96 = math.rsqrt %95 : vector<24x1xf32>
    %97 = vector.broadcast %96 : vector<24x1xf32> to vector<24x32xf32>
    %98 = arith.mulf %93, %97 : vector<24x32xf32>
    %99 = vector.broadcast %16 : vector<1x32xf32> to vector<24x32xf32>
    %100 = arith.mulf %98, %99 : vector<24x32xf32>
    %101 = vector.broadcast %17 : vector<1x32xf32> to vector<24x32xf32>
    %102 = arith.addf %100, %101 : vector<24x32xf32>
    %103 = arith.truncf %102 : vector<24x32xf32> to vector<24x32xbf16>
    %cst_44 = arith.constant dense<0.000000e+00> : vector<24x64xf32>
    %104 = tpu.matmul %103, %7, %cst_44 {dimension_numbers = #tpu.dot_dimension_numbers<[1], [0], [0], [1], [0, 0, 1, 1], [], []>} : vector<24x32xbf16>, vector<32x64xbf16>, vector<24x64xf32> -> vector<24x64xf32>
    %105 = vector.broadcast %9 : vector<1x64xf32> to vector<24x64xf32>
    %106 = arith.addf %104, %105 : vector<24x64xf32>
    %cst_45 = arith.constant 5.000000e-01 : f32
    %107 = vector.broadcast %cst_45 : f32 to vector<24x64xf32>
    %108 = arith.mulf %107, %106 : vector<24x64xf32>
    %cst_46 = arith.constant 4.471500e-02 : f32
    %109 = vector.broadcast %cst_46 : f32 to vector<24x64xf32>
    %110 = arith.mulf %109, %106 : vector<24x64xf32>
    %111 = arith.mulf %110, %106 : vector<24x64xf32>
    %112 = arith.mulf %111, %106 : vector<24x64xf32>
    %113 = arith.addf %106, %112 : vector<24x64xf32>
    %cst_47 = arith.constant 0.797884583 : f32
    %114 = vector.broadcast %cst_47 : f32 to vector<24x64xf32>
    %115 = arith.mulf %114, %113 : vector<24x64xf32>
    %116 = math.tanh %115 : vector<24x64xf32>
    %cst_48 = arith.constant 1.000000e+00 : f32
    %117 = vector.broadcast %cst_48 : f32 to vector<24x64xf32>
    %118 = arith.addf %117, %116 : vector<24x64xf32>
    %119 = arith.mulf %108, %118 : vector<24x64xf32>
    %120 = arith.truncf %119 : vector<24x64xf32> to vector<24x64xbf16>
    %cst_49 = arith.constant dense<0.000000e+00> : vector<24x32xf32>
    %121 = tpu.matmul %120, %11, %cst_49 {dimension_numbers = #tpu.dot_dimension_numbers<[1], [0], [0], [1], [0, 0, 1, 1], [], []>} : vector<24x64xbf16>, vector<64x32xbf16>, vector<24x32xf32> -> vector<24x32xf32>
    %122 = arith.addf %102, %121 : vector<24x32xf32>
    %123 = vector.broadcast %15 : vector<1x32xf32> to vector<24x32xf32>
    %124 = arith.addf %122, %123 : vector<24x32xf32>
    %cst_50 = arith.constant dense<0.000000e+00> : vector<24xf32>
    %125 = vector.multi_reduction <add>, %124, %cst_50 [1] : vector<24x32xf32> to vector<24xf32>
    %126 = vector.shape_cast %125 : vector<24xf32> to vector<24x1xf32>
    %cst_51 = arith.constant 3.200000e+01 : f32
    %127 = vector.broadcast %cst_51 : f32 to vector<24x1xf32>
    %128 = arith.divf %126, %127 : vector<24x1xf32>
    %129 = arith.mulf %124, %124 : vector<24x32xf32>
    %cst_52 = arith.constant dense<0.000000e+00> : vector<24xf32>
    %130 = vector.multi_reduction <add>, %129, %cst_52 [1] : vector<24x32xf32> to vector<24xf32>
    %131 = vector.shape_cast %130 : vector<24xf32> to vector<24x1xf32>
    %cst_53 = arith.constant 3.200000e+01 : f32
    %132 = vector.broadcast %cst_53 : f32 to vector<24x1xf32>
    %133 = arith.divf %131, %132 : vector<24x1xf32>
    %134 = arith.mulf %128, %128 : vector<24x1xf32>
    %135 = arith.subf %133, %134 : vector<24x1xf32>
    %136 = vector.broadcast %128 : vector<24x1xf32> to vector<24x32xf32>
    %137 = arith.subf %124, %136 : vector<24x32xf32>
    %cst_54 = arith.constant 9.99999974E-6 : f32
    %138 = vector.broadcast %cst_54 : f32 to vector<24x1xf32>
    %139 = arith.addf %135, %138 : vector<24x1xf32>
    %140 = math.rsqrt %139 : vector<24x1xf32>
    %141 = vector.broadcast %140 : vector<24x1xf32> to vector<24x32xf32>
    %142 = arith.mulf %137, %141 : vector<24x32xf32>
    %143 = vector.broadcast %18 : vector<1x32xf32> to vector<24x32xf32>
    %144 = arith.mulf %142, %143 : vector<24x32xf32>
    %145 = vector.broadcast %19 : vector<1x32xf32> to vector<24x32xf32>
    %146 = arith.addf %144, %145 : vector<24x32xf32>
    %147 = vector.shape_cast %146 : vector<24x32xf32> to vector<3x8x32xf32>
    %c0_55 = arith.constant 0 : index
    %c0_56 = arith.constant 0 : index
    %c0_57 = arith.constant 0 : index
    %148 = vector.load %arg9[%c0_55, %c0_56, %c0_57] : memref<3x8x32xf32, #tpu.memory_space<vmem>>, vector<3x8x32xf32>
    tpu.vector_store %arg9[%c0_55, %c0_56, %c0_57], %147 {strides = array<i32>} : memref<3x8x32xf32, #tpu.memory_space<vmem>>, vector<3x8x32xf32>,
    return
  }
  func.func @transform_0(%arg0: i32) -> (i32, i32, i32) {
    %c0_i32 = arith.constant 0 : i32
    %c0_i32_0 = arith.constant 0 : i32
    %c0_i32_1 = arith.constant 0 : i32
    return %arg0, %c0_i32, %c0_i32_0 : i32, i32, i32
  }
  func.func @transform_1(%arg0: i32) -> (i32, i32, i32) {
    %c0_i32 = arith.constant 0 : i32
    %c0_i32_0 = arith.constant 0 : i32
    %c0_i32_1 = arith.constant 0 : i32
    %c0_i32_2 = arith.constant 0 : i32
    return %c0_i32, %c0_i32_0, %c0_i32_1 : i32, i32, i32
  }
  func.func @transform_2(%arg0: i32) -> (i32, i32, i32) {
    %c0_i32 = arith.constant 0 : i32
    %c0_i32_0 = arith.constant 0 : i32
    %c0_i32_1 = arith.constant 0 : i32
    %c0_i32_2 = arith.constant 0 : i32
    return %c0_i32, %c0_i32_0, %c0_i32_1 : i32, i32, i32
  }
  func.func @transform_3(%arg0: i32) -> (i32, i32, i32, i32) {
    %c0_i32 = arith.constant 0 : i32
    %c0_i32_0 = arith.constant 0 : i32
    %c0_i32_1 = arith.constant 0 : i32
    %c0_i32_2 = arith.constant 0 : i32
    %c0_i32_3 = arith.constant 0 : i32
    return %c0_i32, %c0_i32_0, %c0_i32_1, %c0_i32_2 : i32, i32, i32, i32
  }
  func.func @transform_4(%arg0: i32) -> (i32, i32, i32) {
    %c0_i32 = arith.constant 0 : i32
    %c0_i32_0 = arith.constant 0 : i32
    %c0_i32_1 = arith.constant 0 : i32
    %c0_i32_2 = arith.constant 0 : i32
    return %c0_i32, %c0_i32_0, %c0_i32_1 : i32, i32, i32
  }
  func.func @transform_5(%arg0: i32) -> (i32, i32, i32) {
    %c0_i32 = arith.constant 0 : i32
    %c0_i32_0 = arith.constant 0 : i32
    %c0_i32_1 = arith.constant 0 : i32
    %c0_i32_2 = arith.constant 0 : i32
    return %c0_i32, %c0_i32_0, %c0_i32_1 : i32, i32, i32
  }
  func.func @transform_6(%arg0: i32) -> (i32, i32, i32) {
    %c0_i32 = arith.constant 0 : i32
    %c0_i32_0 = arith.constant 0 : i32
    %c0_i32_1 = arith.constant 0 : i32
    %c0_i32_2 = arith.constant 0 : i32
    return %c0_i32, %c0_i32_0, %c0_i32_1 : i32, i32, i32
  }
  func.func @transform_7(%arg0: i32) -> (i32, i32, i32) {
    %c0_i32 = arith.constant 0 : i32
    %c0_i32_0 = arith.constant 0 : i32
    %c0_i32_1 = arith.constant 0 : i32
    %c0_i32_2 = arith.constant 0 : i32
    return %c0_i32, %c0_i32_0, %c0_i32_1 : i32, i32, i32
  }
  func.func @transform_8(%arg0: i32) -> (i32, i32, i32) {
    %c0_i32 = arith.constant 0 : i32
    %c0_i32_0 = arith.constant 0 : i32
    %c0_i32_1 = arith.constant 0 : i32
    return %arg0, %c0_i32, %c0_i32_0 : i32, i32, i32
  }
}

</mosaic_0001>

<bundles_post_ra>
// kernel: _encoder_pallas.1
= control target key start
LH: loop header
LB: loop body
LE: loop exit
PB: predicated region body
PF: predicated region fallthrough
CT: control target
= control target key end

     0   :  { %s2093_s0 = inlined_call_operand.vmem [shape: f32[6,8,32], index: 0, kind: input, shape index: {}]   ;;  %s2094_s1 = inlined_call_operand.hbm [shape: bf16[1,32,96], index: 1, kind: input, shape index: {}]   ;;  %s2095_s2 = inlined_call_operand.vmem [shape: f32[1,1,96], index: 2, kind: input, shape index: {}]   ;;  %s2096_s3 = inlined_call_operand.hbm [shape: bf16[1,2,16,32], index: 3, kind: input, shape index: {}]   ;;  %s2097_s4 = inlined_call_operand.hbm [shape: bf16[1,32,64], index: 4, kind: input, shape index: {}]   ;;  %s2098_s5 = inlined_call_operand.vmem [shape: f32[1,1,64], index: 5, kind: input, shape index: {}]   ;;  %s2099_s6 = inlined_call_operand.vmem [shape: bf16[1,64,32], index: 6, kind: input, shape index: {}]   ;;  %s2100_s7 = inlined_call_operand.hbm [shape: f32[1,8,32], index: 7, kind: input, shape index: {}]   ;;  %s2101_s8 = inlined_call_operand.hbm [shape: f32[6,8,32], index: 8, kind: output, shape index: {}]  }
   0x1   :  { %2103 = sst [smem:[#allocation17_spill]] %s2094_s1 }
   0x2   :  { %2104 = sst [smem:[#allocation18_spill]] %s2096_s3 }
   0x3   :  { %13 = vsyncpa [#allocation3], 0 }
   0x4   :  { %14 = vsyncpa [#allocation6], 0 }
   0x5   :  { %15 = vsyncpa [#allocation9], 0 }
   0x6   :  { %16 = vsyncpa [#allocation4], 0 }
   0x7   :  { %18 = vsyncpa [#allocation4 + $0x1], 0  ;;  %s1760_s27 = smov 0   ;;  %s1762_s28 = smov 0  }
   0x8   :  { %s1764_s29 = smov 0   ;;  %s1766_s30 = smov 0  }
   0x9 LB: > { %2105 = sst [smem:[#allocation15_spill]] %s1695_s29  ;;  %s1781_s9 = sadd.s32 4294967295, %s1699_s30   ;;  %s1699_s30 = sphi %s1766_s30, %s2117_s30   ;;  %s1695_s29 = sphi %s1764_s29, %s2114_s29   ;;  %s1691_s28 = sphi %s1762_s28, %s2116_s28   ;;  %s1687_s27 = sphi %s1760_s27, %s2115_s27  }
   0xa   : > { %s1279_s10 = sadd.s32 4294967294, %s1699_s30   ;;  %s1785_s11 = sadd.s32 1, %s1699_s30  }
   0xb   : > { %s204_s12 = sadd.s32 1, %s1695_s29  ;;  %s201_s13 = ssub.s32 %s1699_s30, %s1785_s11 }
   0xc   : > { %p214_p0 = scmp.ne.s32.totalorder %s1695_s29, %s1691_s28  ;;  %p202_p1 = scmp.eq.s32.totalorder %s201_s13, 0 }
   0xd   : > { %p215_p2 = scmp.eq.s32.totalorder %s1781_s9, 1  ;;  %p220_p3 = scmp.ne.s32.totalorder %s1691_s28, %s1687_s27 }
   0xe   : > { %p221_p4 = scmp.eq.s32.totalorder %s1279_s10, 1  ;;  %p1280_p7 = scmp.ge.s32.totalorder %s1699_s30, 1 }
   0xf   : > { %s1796_s14 = scalar_select %p202_p1, %s1695_s29, %s204_s12  }
  0x10   : > { %p1798_p5 = por %p215_p2, %p214_p0  ;;  %p1802_p6 = por %p221_p4, %p220_p3 }
  0x11   : > { %2106 = sst [smem:[#allocation16_spill]] %s1796_s14  ;;  %p228_p8 = scmp.lt.s32.totalorder %s1699_s30, 3 }
  0x12   : > { %p1404_p9 = scmp.eq.s32.totalorder %s1781_s9, 0  ;;  %s2110_s3 = sld [smem:[#allocation18_spill]] }
  0x13   : > { %p1809_p10 = pnand %p1280_p7, %p228_p8  ;;  %s2111_s1 = sld [smem:[#allocation17_spill]] }
  0x14   : > { %s1701_s25 = smov [#allocation5]   ;;  %s1702_s10 = smov 64  }
  0x15   : > { %p1387_p11 = pneg %p1809_p10  ;;  %s258_s26 = sshll.u32 %s1701_s25, 4  ;;  %s259_s26 = int_to_ptr.vmem [resolvable:$true] %s258_s26 }
  0x16   : > { %s1703_s12 = smov 4   ;;  %s1704_s13 = smov [#allocation2]  }
  0x17   : > { %p1823_p12 = pnand %p1404_p9, %p1387_p11  ;;  %s241_s18 = sshll.u32 %s1704_s13, 4  ;;  %s242_s18 = int_to_ptr.vmem [resolvable:$true] %s241_s18 }
  0x18   : > { %s256_s20 = sshll.u32 %s2110_s3, 4  ;;  %s270_s22 = sshll.u32 %s2097_s4, 4  ;;  %s257_s20 = int_to_ptr.hbm [resolvable:$true] %s256_s20  ;;  %s271_s22 = int_to_ptr.hbm [resolvable:$true] %s270_s22 }
  0x19   : > { %s239_s23 = sshll.u32 %s2111_s1, 4  ;;  %s291_s3 = sshll.u32 %s2100_s7, 4  ;;  %s240_s23 = int_to_ptr.hbm [resolvable:$true] %s239_s23  ;;  %s292_s3 = int_to_ptr.hbm [resolvable:$true] %s291_s3 }
  0x1a   : > { %1393 = dma.hbm_to_vmem [thread:$0]  (!%p1823_p12), %s257_s20, 256, %s259_s26, [#allocation6], %s1702_s10, %s1702_s10, %s1703_s12  }
  0x1b   : > { %1390 = dma.hbm_to_vmem [thread:$0]  (!%p1823_p12), %s240_s23, 256, %s242_s18, [#allocation3], %s1702_s10, %s1702_s10, %s1703_s12  }
  0x1c   : > { %s1705_s14 = smov [#allocation7]   ;;  %s1706_s20 = smov [#allocation8]  }
  0x1d   : > { %s272_s29 = sshll.u32 %s1705_s14, 4  ;;  %s293_s26 = sshll.u32 %s1706_s20, 4  ;;  %s273_s29 = int_to_ptr.vmem [resolvable:$true] %s272_s29  ;;  %s294_s26 = int_to_ptr.vmem [resolvable:$true] %s293_s26 }
  0x1e   : > { %1396 = dma.hbm_to_vmem [thread:$0]  (!%p1823_p12), %s271_s22, 256, %s273_s29, [#allocation6], %s1702_s10, %s1702_s10, %s1703_s12  }
  0x1f   : > { %1399 = dma.hbm_to_vmem [thread:$0]  (!%p1823_p12), %s292_s3, 128, %s294_s26, [#allocation9]  }
  0x20   : > { %315 = sbr.rel (%p1809_p10) target bundleno = 1983 (0x7bf), region = 52 }
  0x25   : > { %1670 = dma.done.wait (%p1404_p9), [#allocation3], 256  }
  0x26   : > { %1672 = vsyncadd (%p1404_p9), [#allocation3], 4294967040 }
  0x27   : > { %1674 = dma.done.wait (%p1404_p9), [#allocation6], 512  }
  0x28   : > { %1676 = vsyncadd (%p1404_p9), [#allocation6], 4294966784 }
  0x29   : > { %1678 = dma.done.wait (%p1404_p9), [#allocation9], 128  }
  0x2a   : > { %1680 = vsyncadd (%p1404_p9), [#allocation9], 4294967168  ;;  %s365_s1 = smul.u32 3, %s1781_s9  ;;  %v1358_v0 = vld [vmem:[#allocation2 + $0x8] sm:$0xff]  ;;  %v1357_v1 = vld [vmem:[#allocation2] sm:$0xff]  ;;  %vm412_vm0 = vcmask 261120  }
  0x2b   : > { %425 = vmatpush.bf16.msra.mxu0 %v1358_v0  ;;  %v1459_v7 = vld [vmem:[%s2095_s2] ss:$0 sm:$0xff]  ;;  %s1707_s10 = smov 96   ;;  %s1708_s12 = smov 64   ;;  %vm445_vm1 = vcmask 130048   ;;  %vm558_vm2 = vcmask 1043456  }
  0x2c   : > { %p366_p13 = scmp.lt.s32.totalorder %s365_s1, 5  ;;  %s1709_s13 = smov 80   ;;  %vm516_vm3 = vcmask 64512   ;;  %vm1045_vm14 = vcmask 523264  }
  0x2d   : > { %s1710_s18 = smov 112   ;;  %s1711_s19 = smov 48  }
  0x2e   : > { %s2119_s1 = smov (!%p366_p13, %s365_s1), 5  ;;  %s362_s23 = sand.u32 1, %s1691_s28  }
  0x2f   : > { %s1291_s3 = sshll.u32 %s2119_s1, 3  ;;  %426 = vmatpush.bf16.msra.mxu0 %v1357_v1  ;;  %s1368_s24 = smul.u32 24, %s362_s23 }
  0x30   : > { %s369_s17 = scalar_lea.vmem %s2093_s0, %s1291_s3  ;;  %s1161_s22 = scalar_lea.sflag [#allocation4], %s362_s23 }
  0x31   : > { %v1859_v2 = vld [vmem:[%s369_s17] sm:$0xff]  ;;  %v1861_v3 = vld [vmem:[%s369_s17 + $0x8] sm:$0xff]  ;;  %v1866_v5 = vld [vmem:[%s369_s17 + $0x10] sm:$0xff]  ;;  %s1645_s3 = scalar_lea.hbm %s2101_s8, 48 }
  0x32   : > { %v395_v4 = vpack.c.bf16 %v1861_v3, %v1859_v2  ;;  %v396_v6 = vpack.c.bf16 %v1866_v5, %v1866_v5 }
  0x34   : > { %1300 = vmatmul.msk.bf16.vlgmr.msra.gmra.mxu0 %vm412_vm0, %v395_v4 }
  0x44   : > { %1301 = vmatmul.msk.bf16.gmra.mxu0 %vm412_vm0, %v396_v6 }
  0xb1   : > { %v428_v8 = vpop.f32.mrf.mxu0 }
  0xb2   : > { %v429_v9 = vadd.f32 %v1459_v7, %v428_v8 }
  0xb4   : > { %v437_v10 = vpack.c.bf16 %v429_v9, %v429_v9 }
  0xb6   : > { %v441_v11 = vunpack.c.l.b16 %v437_v10 }
  0xb8   : > { %v1874_v12 = vpack.c.b16 %v441_v11, %v441_v11 }
  0xb9   : > { %v430_v13 = vpop.f32.mrf.mxu0 }
  0xba   : > { %v431_v14 = vadd.f32 %v1459_v7, %v430_v13  ;;  %443 = vrot.lane.b32.xlu0 %v1874_v12, %s1707_s10 }
  0xbc   : > { %v438_v15 = vpack.c.bf16 %v431_v14, %v431_v14 }
  0xbe   : > { %v466_v16 = vunpack.c.l.b16 %v438_v15 }
  0xc0   : > { %v1877_v17 = vpack.c.b16 %v466_v16, %v466_v16 }
  0xc1   : > { %v433_v18 = vpop.f32.mrf.mxu0 }
  0xc2   : > { %468 = vrot.lane.b32.xlu0 %v1877_v17, %s1707_s10  ;;  %v434_v19 = vadd.f32 %v1459_v7, %v433_v18 }
  0xc4   : > { %v439_v20 = vpack.c.bf16 %v434_v19, %v434_v19 }
  0xc6   : > { %v490_v21 = vunpack.c.l.b16 %v439_v20 }
  0xc8   : > { %v1880_v22 = vpack.c.b16 %v490_v21, %v490_v21 }
  0xc9   : > { %v435_v23 = vpop.f32.mrf.mxu0 }
  0xca   : > { %553 = vrot.lane.b32.xlu0 %v1874_v12, %s1708_s12  ;;  %492 = vrot.lane.b32.xlu2 %v1880_v22, %s1707_s10  ;;  %s364_s10 = scalar_lea.vmem [#allocation10], %s1368_s24 }
  0xd2   : > { %646 = vrot.lane.b32.xlu0 %v1877_v17, %s1709_s13 }
  0xda   : > { %621 = vrot.lane.b32.xlu0 %v1874_v12, %s1710_s18 }
 0x124   : > { %v493_v25 = vpop.permute.xlu2 %492 }
 0x125   : > { %v498_v27 = vsel %vm445_vm1, %v493_v25, 0 }
 0x126   : > { %507 = vmatpush.bf16.xpose.msra.mxu3 %v498_v27 }
 0x12c   : > { %v444_v24 = vpop.permute.xlu0 %443 }
 0x12d   : > { %v450_v26 = vsel %vm445_vm1, %v444_v24, 0  ;;  %1304 = vmatmul.msk.bf16.vlgmr.msra.gmra.mxu3 %vm445_vm1, %v439_v20 }
 0x12e   : > { %459 = vmatpush.bf16.xpose.msra.mxu1 %v450_v26 }
 0x134   : > { %v469_v28 = vpop.permute.xlu0 %468 }
 0x135   : > { %1302 = vmatmul.msk.bf16.vlgmr.msra.gmra.mxu1 %vm445_vm1, %v437_v10  ;;  %v474_v29 = vsel %vm445_vm1, %v469_v28, 0 }
 0x136   : > { %483 = vmatpush.bf16.xpose.msra.mxu2 %v474_v29 }
 0x13c   : > { %v554_v30 = vpop.permute.xlu0 %553 }
 0x13d   : > { %1303 = vmatmul.msk.bf16.vlgmr.msra.gmra.mxu2 %vm445_vm1, %v438_v15  ;;  %v560_v31 = vsel %vm558_vm2, %v554_v30, 0 }
 0x13e   : > { %569 = vmatpush.bf16.msrb.mxu1 %v560_v31 }
 0x144   : > { %v647_v32 = vpop.permute.xlu0 %646 }
 0x145   : > { %v652_v33 = vsel %vm445_vm1, %v647_v32, 0 }
 0x146   : > { %661 = vmatpush.bf16.xpose.msra.mxu1 %v652_v33 }
 0x14c   : > { %v622_v58 = vpop.permute.xlu0 %621 }
 0x1b0   : > { %v509_v42 = vpop.f32.mrf.mxu3 }
 0x1b1   : > { %v515_v44 = vmul.f32 0.25, %v509_v42 }
 0x1b2   : > { %v461_v34 = vpop.f32.mrf.mxu1 }
 0x1b3   : > { %v513_v35 = vmul.f32 0.25, %v461_v34  ;;  %v523_v45 = vsel %vm516_vm3, %v515_v44, -inf }
 0x1b5   : > { %v517_v36 = vsel %vm516_vm3, %v513_v35, -inf }
 0x1b6   : > { %518 = vmax.xlane.f32.xlu1 %v517_v36 }
 0x1b8   : > { %v511_v43 = vpop.f32.mrf.mxu3 }
 0x1ba   : > { %v463_v37 = vpop.f32.mrf.mxu1 }
 0x1c0   : > { %v485_v38 = vpop.f32.mrf.mxu2 }
 0x1c1   : > { %v514_v39 = vmul.f32 0.25, %v485_v38 }
 0x1c3   : > { %v520_v40 = vsel %vm516_vm3, %v514_v39, -inf }
 0x1c4   : > { %521 = vmax.xlane.f32.xlu1 %v520_v40 }
 0x1c8   : > { %v487_v41 = vpop.f32.mrf.mxu2 }
 0x1dd   : > { %623 = vrot.lane.b32.xlu1 %v1874_v12, %s1709_s13 }
 0x1e5   : > { %644 = vrot.lane.b32.xlu1 %v1877_v17, %s1710_s18 }
 0x1ed   : > { %575 = vrot.lane.b32.xlu1 %v1877_v17, %s1708_s12 }
 0x1f5   : > { %667 = vrot.lane.b32.xlu1 %v1880_v22, %s1710_s18 }
 0x21f   : > { %524 = vmax.xlane.f32.xlu1 %v523_v45 }
 0x229   : > { %v519_v46 = vpop.xlane.xlu1 %518 }
 0x22a   : > { %v526_v47 = vsub.f32 %v513_v35, %v519_v46 }
 0x22c   : > { %v529_v48 = vmul.f32 1.442695, %v526_v47 }
 0x22e   : > { %1461 = vpow2.f32 %v529_v48 }
 0x234   : > { %v1462_v49 = vpop.eup %1461 }
 0x235   : > { %v535_v50 = vsel %vm516_vm3, %v1462_v49, 0.0 }
 0x236   : > { %536 = vadd.xlane.f32.xlu2 %v535_v50 }
 0x237   : > { %v522_v51 = vpop.xlane.xlu1 %521 }
 0x238   : > { %v527_v52 = vsub.f32 %v514_v39, %v522_v51 }
 0x23a   : > { %v531_v53 = vmul.f32 1.442695, %v527_v52 }
 0x23c   : > { %1463 = vpow2.f32 %v531_v53 }
 0x242   : > { %v1464_v54 = vpop.eup %1463 }
 0x243   : > { %v538_v55 = vsel %vm516_vm3, %v1464_v54, 0.0 }
 0x244   : > { %539 = vadd.xlane.f32.xlu0 %v538_v55 }
 0x24e   : > { %669 = vrot.lane.b32.xlu2 %v1880_v22, %s1709_s13 }
 0x24f   : > { %v624_v56 = vpop.permute.xlu1 %623 }
 0x250   : > { %v629_v57 = vsel %vm445_vm1, %v624_v56, 0 }
 0x251   : > { %638 = vmatpush.bf16.xpose.msrb.mxu0 %v629_v57  ;;  %v1365_v57 = vld [vmem:[#allocation5] sm:$0xff] }
 0x257   : > { %v645_v59 = vpop.permute.xlu1 %644 }
 0x258   : > { %1308 = vmatmul.msk.bf16.vlgmr.msrb.gmra.mxu0 %vm445_vm1, %v622_v58 }
 0x25f   : > { %v576_v60 = vpop.permute.xlu1 %575 }
 0x260   : > { %v581_v61 = vsel %vm558_vm2, %v576_v60, 0 }
 0x261   : > { %590 = vmatpush.bf16.msrb.mxu2 %v581_v61 }
 0x267   : > { %v668_v62 = vpop.permute.xlu1 %667 }
 0x292   : > { %v525_v63 = vpop.xlane.xlu1 %524 }
 0x293   : > { %v528_v0 = vsub.f32 %v515_v44, %v525_v63 }
 0x295   : > { %v533_v1 = vmul.f32 1.442695, %v528_v0 }
 0x297   : > { %1465 = vpow2.f32 %v533_v1 }
 0x29d   : > { %v1915_v4 = vpop.eup %1465 }
 0x29e   : > { %v541_v6 = vsel %vm516_vm3, %v1915_v4, 0.0 }
 0x29f   : > { %542 = vadd.xlane.f32.xlu0 %v541_v6 }
 0x2a9   : > { %v537_v7 = vpop.xlane.xlu2 %536 }
 0x2aa   : > { %1467 = vrcp.f32 %v537_v7 }
 0x2b0   : > { %v1468_v8 = vpop.eup %1467 }
 0x2b1   : > { %v547_v9 = vmul.f32 %v1468_v8, %v1462_v49  ;;  %v670_v10 = vpop.permute.xlu2 %669 }
 0x2b2   : > { %v675_v11 = vsel %vm445_vm1, %v670_v10, 0 }
 0x2b3   : > { %684 = vmatpush.bf16.xpose.msra.mxu2 %v675_v11  ;;  %v550_v13 = vpack.c.bf16 %v547_v9, %v547_v9 }
 0x2b5   : > { %1305 = vmatmul.msk.bf16.vlgmr.msrb.gmra.mxu1 %vm516_vm3, %v550_v13 }
 0x2b7   : > { %v540_v14 = vpop.xlane.xlu0 %539 }
 0x2b8   : > { %1469 = vrcp.f32 %v540_v14 }
 0x2be   : > { %v1470_v15 = vpop.eup %1469 }
 0x2bf   : > { %v548_v16 = vmul.f32 %v1470_v15, %v1464_v54 }
 0x2c1   : > { %v551_v18 = vpack.c.bf16 %v548_v16, %v548_v16 }
 0x2c3   : > { %1306 = vmatmul.msk.bf16.vlgmr.msrb.gmra.mxu2 %vm516_vm3, %v551_v18 }
 0x2c5   : > { %1309 = vmatmul.msk.bf16.vlgmr.msra.gmra.mxu1 %vm445_vm1, %v645_v59 }
 0x2d3   : > { %1310 = vmatmul.msk.bf16.vlgmr.msra.gmra.mxu2 %vm445_vm1, %v668_v62 }
 0x2d5   : > { %v640_v19 = vpop.f32.mrf.mxu0 }
 0x2d6   : > { %v690_v20 = vmul.f32 0.25, %v640_v19 }
 0x2d8   : > { %v693_v21 = vsel %vm516_vm3, %v690_v20, -inf }
 0x2d9   : > { %694 = vmax.xlane.f32.xlu2 %v693_v21 }
 0x2dd   : > { %v642_v23 = vpop.f32.mrf.mxu0 }
 0x312   : > { %v543_v42 = vpop.xlane.xlu0 %542 }
 0x332   : > { %v1925_v24 = vpop.f32.mrf.mxu1 }
 0x33a   : > { %v573_v25 = vpop.f32.mrf.mxu1 }
 0x342   : > { %v663_v26 = vpop.f32.mrf.mxu1 }
 0x343   : > { %v691_v27 = vmul.f32 0.25, %v663_v26 }
 0x345   : > { %v696_v28 = vsel %vm516_vm3, %v691_v27, -inf }
 0x346   : > { %697 = vmax.xlane.f32.xlu0 %v696_v28  ;;  %v592_v29 = vpop.f32.mrf.mxu2 }
 0x347   : > { %v617_v30 = vpack.c.bf16 %v592_v29, %v1925_v24 }
 0x34a   : > { %v665_v31 = vpop.f32.mrf.mxu1 }
 0x34c   : > { %v695_v32 = vpop.xlane.xlu2 %694 }
 0x34d   : > { %v702_v33 = vsub.f32 %v690_v20, %v695_v32  ;;  %v1366_v20 = vld [vmem:[#allocation5 + $0x8] sm:$0xff]  ;;  %v1951_v32 = vld [vmem:[#allocation8] sm:$0xff] }
 0x34e   : > { %v594_v34 = vpop.f32.mrf.mxu2  ;;  %816 = vmatpush.bf16.msrb.mxu2 %v1366_v20 }
 0x34f   : > { %v705_v35 = vmul.f32 1.442695, %v702_v33  ;;  %v857_v33 = vperm.slane %v1951_v32, 0 }
 0x351   : > { %1471 = vpow2.f32 %v705_v35 }
 0x356   : > { %v686_v36 = vpop.f32.mrf.mxu2 }
 0x357   : > { %v1472_v37 = vpop.eup %1471  ;;  %v692_v38 = vmul.f32 0.25, %v686_v36 }
 0x358   : > { %v711_v39 = vsel %vm516_vm3, %v1472_v37, 0.0 }
 0x359   : > { %712 = vadd.xlane.f32.xlu1 %v711_v39  ;;  %v699_v40 = vsel %vm516_vm3, %v692_v38, -inf }
 0x35a   : > { %700 = vmax.xlane.f32.xlu0 %v699_v40 }
 0x35e   : > { %v688_v41 = vpop.f32.mrf.mxu2 }
 0x36e   : > { %596 = vrot.lane.b32.xlu0 %v1880_v22, %s1708_s12  ;;  %s1367_s12 = smul.u32 24, %s1781_s9  ;;  %s1173_s9 = sshll.u32 %s364_s10, 4  ;;  %s1174_s9 = int_to_ptr.vmem [resolvable:$true] %s1173_s9 }
 0x372   : > { %729 = vrot.lane.b32.xlu1 %v1874_v12, %s1711_s19 }
 0x37a   : > { %771 = vrot.lane.b32.xlu1 %v1880_v22, %s1711_s19 }
 0x3b9   : > { %v698_v43 = vpop.xlane.xlu0 %697 }
 0x3ba   : > { %v703_v44 = vsub.f32 %v691_v27, %v698_v43 }
 0x3bc   : > { %v707_v45 = vmul.f32 1.442695, %v703_v44 }
 0x3be   : > { %1473 = vpow2.f32 %v707_v45 }
 0x3c4   : > { %v1474_v46 = vpop.eup %1473 }
 0x3c5   : > { %v714_v47 = vsel %vm516_vm3, %v1474_v46, 0.0 }
 0x3c6   : > { %715 = vadd.xlane.f32.xlu2 %v714_v47 }
 0x3cc   : > { %v713_v22 = vpop.xlane.xlu1 %712 }
 0x3cd   : > { %v701_v48 = vpop.xlane.xlu0 %700 }
 0x3ce   : > { %v704_v49 = vsub.f32 %v692_v38, %v701_v48 }
 0x3d0   : > { %v709_v50 = vmul.f32 1.442695, %v704_v49 }
 0x3d2   : > { %1475 = vpow2.f32 %v709_v50 }
 0x3d3   : > { %1477 = vrcp.f32 %v543_v42 }
 0x3d4   : > { %1479 = vrcp.f32 %v713_v22  ;;  %v1712_v22 = vmov 32.0  }
 0x3d8   : > { %v1476_v51 = vpop.eup %1475 }
 0x3d9   : > { %v717_v52 = vsel %vm516_vm3, %v1476_v51, 0.0  ;;  %v1478_v12 = vpop.eup %1477 }
 0x3da   : > { %718 = vadd.xlane.f32.xlu0 %v717_v52  ;;  %v549_v53 = vmul.f32 %v1478_v12, %v1915_v4  ;;  %v1480_v60 = vpop.eup %1479 }
 0x3db   : > { %v723_v62 = vmul.f32 %v1480_v60, %v1472_v37 }
 0x3dc   : > { %v552_v56 = vpack.c.bf16 %v549_v53, %v549_v53 }
 0x3dd   : > { %v726_v63 = vpack.c.bf16 %v723_v62, %v723_v62 }
 0x3de   : > { %750 = vrot.lane.b32.xlu2 %v1877_v17, %s1711_s19  ;;  %s1172_s19 = scalar_lea.hbm %s2101_s8, %s1367_s12 }
 0x3df   : > { %s1175_s21 = sshll.u32 %s1172_s19, 4  ;;  %s1176_s21 = int_to_ptr.hbm [resolvable:$true] %s1175_s21 }
 0x3e0   : > { %v597_v54 = vpop.permute.xlu0 %596  ;;  %s1639_s25 = sshra.s32 %s1176_s21, 4  ;;  %s1640_s25 = int_to_ptr.hbm [resolvable:$true] %s1639_s25 }
 0x3e1   : > { %v602_v55 = vsel %vm558_vm2, %v597_v54, 0  ;;  %s1641_s20 = scalar_lea.hbm %s1640_s25, 24  ;;  %p1646_p3 = scmp.lt.s32.totalorder %s1640_s25, %s2101_s8 }
 0x3e2   : > { %611 = vmatpush.bf16.msrb.mxu3 %v602_v55  ;;  %p1642_p0 = scmp.ne.s32.totalorder %s1640_s25, %s1641_s20  ;;  %p1647_p4 = scmp.lt.s32.totalorder %s1645_s3, %s1641_s20 }
 0x3e4   : > { %v730_v58 = vpop.permute.xlu1 %729  ;;  %p1643_p1 = pnand %p1642_p0, %p1798_p5  ;;  %p1648_p7 = por %p1647_p4, %p1646_p3 }
 0x3e5   : > { %v735_v59 = vsel %vm558_vm2, %v730_v58, 0  ;;  %1307 = vmatmul.msk.bf16.vlgmr.msrb.gmra.mxu3 %vm516_vm3, %v552_v56 }
 0x3e6   : > { %744 = vmatpush.bf16.msra.mxu3 %v735_v59  ;;  %p1644_p2 = pneg %p1643_p1 }
 0x3e8   : > { %p1649_p8 = pnand %p1648_p7, %p1644_p2 }
 0x3ea   : > { %846 = vmatpush.bf16.msrb.mxu3 %v1365_v57 }
 0x3ec   : > { %v772_v61 = vpop.permute.xlu1 %771 }
 0x3ed   : > { %v777_v17 = vsel %vm558_vm2, %v772_v61, 0  ;;  %v1360_v61 = vld [vmem:[#allocation7 + $0x8] sm:$0xff] }
 0x3ee   : > { %786 = vmatpush.bf16.msrb.mxu1 %v777_v17 }
 0x3f5   : > { %1311 = vmatmul.msk.bf16.vlgmr.msra.gmra.mxu3 %vm516_vm3, %v726_v63 }
 0x405   : > { %1324 = vmatmul.msk.bf16.vlgmr.msrb.gmra.mxu3 %vm445_vm1, %v617_v30 }
 0x439   : > { %v716_v0 = vpop.xlane.xlu2 %715 }
 0x43a   : > { %1481 = vrcp.f32 %v716_v0  ;;  %v1359_v0 = vld [vmem:[#allocation7] sm:$0xff] }
 0x440   : > { %v1482_v1 = vpop.eup %1481 }
 0x441   : > { %v724_v4 = vmul.f32 %v1482_v1, %v1474_v46  ;;  %v751_v6 = vpop.permute.xlu2 %750 }
 0x442   : > { %v756_v7 = vsel %vm558_vm2, %v751_v6, 0 }
 0x443   : > { %v727_v8 = vpack.c.bf16 %v724_v4, %v724_v4  ;;  %765 = vmatpush.bf16.msra.mxu0 %v756_v7 }
 0x446   : > { %1312 = vmatmul.msk.bf16.vlgmr.msra.gmra.mxu0 %vm516_vm3, %v727_v8 }
 0x447   : > { %980 = vmatpush.bf16.msrb.mxu0 %v1360_v61 }
 0x44b   : > { %981 = vmatpush.bf16.msrb.mxu0 %v1359_v0 }
 0x44d   : > { %v719_v9 = vpop.xlane.xlu0 %718 }
 0x44e   : > { %1483 = vrcp.f32 %v719_v9 }
 0x44f   : > { %1485 = vrcp.f32 %v1712_v22 }
 0x454   : > { %v1484_v10 = vpop.eup %1483 }
 0x455   : > { %v725_v11 = vmul.f32 %v1484_v10, %v1476_v51  ;;  %v1486_v53 = vpop.eup %1485 }
 0x456   : > { %v874_v54 = vmul.f32 32.0, %v1486_v53  ;;  %vm878_vm4 = vweird.f32 %v1486_v53 }
 0x457   : > { %v728_v13 = vpack.c.bf16 %v725_v11, %v725_v11 }
 0x458   : > { %v875_v55 = vsub.f32 1.0, %v874_v54 }
 0x459   : > { %1313 = vmatmul.msk.bf16.vlgmr.msrb.gmra.mxu1 %vm516_vm3, %v728_v13 }
 0x45a   : > { %v876_v56 = vmul.f32 %v1486_v53, %v875_v55 }
 0x45c   : > { %v877_v57 = vadd.f32 %v1486_v53, %v876_v56 }
 0x468   : > { %v613_v14 = vpop.f32.mrf.mxu3 }
 0x469   : > { %v618_v15 = vpack.c.bf16 %v613_v14, %v613_v14 }
 0x46b   : > { %1325 = vmatmul.msk.bf16.gmra.mxu3 %vm445_vm1, %v618_v15 }
 0x470   : > { %v615_v16 = vpop.f32.mrf.mxu3 }
 0x478   : > { %v746_v18 = vpop.f32.mrf.mxu3 }
 0x480   : > { %v748_v19 = vpop.f32.mrf.mxu3 }
 0x488   : > { %v848_v27 = vpop.f32.mrf.mxu3 }
 0x490   : > { %v850_v29 = vpop.f32.mrf.mxu3 }
 0x4c3   : > { %v767_v21 = vpop.f32.mrf.mxu0 }
 0x4c4   : > { %v792_v23 = vpack.c.bf16 %v767_v21, %v746_v18 }
 0x4c6   : > { %1318 = vmatmul.msk.bf16.vlgmr.msrb.gmra.mxu2 %vm445_vm1, %v792_v23 }
 0x4cb   : > { %v769_v24 = vpop.f32.mrf.mxu0 }
 0x4d6   : > { %v788_v25 = vpop.f32.mrf.mxu1 }
 0x4d7   : > { %v793_v26 = vpack.c.bf16 %v788_v25, %v788_v25 }
 0x4d9   : > { %1319 = vmatmul.msk.bf16.gmra.mxu2 %vm445_vm1, %v793_v26 }
 0x4de   : > { %v790_v28 = vpop.f32.mrf.mxu1 }
 0x4ee   : > { %v853_v30 = vpop.f32.mrf.mxu3 }
 0x4f6   : > { %v855_v31 = vpop.f32.mrf.mxu3 }
 0x549   : > { %v818_v34 = vpop.f32.mrf.mxu2 }
 0x54a   : > { %v849_v35 = vadd.f32 %v848_v27, %v818_v34 }
 0x54c   : > { %v858_v36 = vadd.f32 %v857_v33, %v849_v35 }
 0x54e   : > { %v1955_v37 = vadd.f32 %v858_v36, %v1859_v2  ;;  %v943_v36 = vperm.slane %v1951_v32, 2 }
 0x550   : > { %v864_v38 = vsel %vm412_vm0, %v1955_v37, 0.0  ;;  %v883_v39 = vmul.f32 %v1955_v37, %v1955_v37 }
 0x551   : > { %v820_v40 = vpop.f32.mrf.mxu2  ;;  %865 = vadd.xlane.f32.xlu2 %v864_v38 }
 0x552   : > { %v851_v41 = vadd.f32 %v850_v29, %v820_v40  ;;  %v886_v42 = vsel %vm412_vm0, %v883_v39, 0.0 }
 0x553   : > { %887 = vadd.xlane.f32.xlu0 %v886_v42 }
 0x554   : > { %v859_v43 = vadd.f32 %v857_v33, %v851_v41 }
 0x556   : > { %v1963_v44 = vadd.f32 %v859_v43, %v1861_v3 }
 0x558   : > { %v867_v2 = vsel %vm412_vm0, %v1963_v44, 0.0  ;;  %v884_v45 = vmul.f32 %v1963_v44, %v1963_v44 }
 0x559   : > { %868 = vadd.xlane.f32.xlu1 %v867_v2 }
 0x55a   : > { %v889_v46 = vsel %vm412_vm0, %v884_v45, 0.0 }
 0x55b   : > { %890 = vadd.xlane.f32.xlu0 %v889_v46  ;;  %v947_v46 = vperm.slane %v1951_v32, 3 }
 0x55c   : > { %v823_v47 = vpop.f32.mrf.mxu2 }
 0x55d   : > { %v854_v48 = vadd.f32 %v853_v30, %v823_v47 }
 0x55f   : > { %v860_v49 = vadd.f32 %v857_v33, %v854_v48 }
 0x561   : > { %v1971_v50 = vadd.f32 %v860_v49, %v1866_v5  ;;  %v1978_v5 = vsel %vm878_vm4, %v1486_v53, %v877_v57  ;;  %v1364_v57 = vld [vmem:[%s2099_s6 + $0x18] sm:$0xff] }
 0x562   : > { %1056 = vmatpush.bf16.msra.mxu1 %v1364_v57 }
 0x563   : > { %v870_v3 = vsel %vm412_vm0, %v1971_v50, 0.0  ;;  %v885_v51 = vmul.f32 %v1971_v50, %v1971_v50 }
 0x564   : > { %871 = vadd.xlane.f32.xlu0 %v870_v3  ;;  %v825_v52 = vpop.f32.mrf.mxu2 }
 0x565   : > { %v892_v12 = vsel %vm412_vm0, %v885_v51, 0.0 }
 0x566   : > { %893 = vadd.xlane.f32.xlu2 %v892_v12 }
 0x5c4   : > { %v866_v58 = vpop.xlane.xlu2 %865 }
 0x5c5   : > { %v880_v59 = vmul.f32 %v1978_v5, %v866_v58  ;;  %v1362_v58 = vld [vmem:[%s2099_s6 + $0x8] sm:$0xff] }
 0x5c6   : > { %v888_v60 = vpop.xlane.xlu0 %887 }
 0x5c7   : > { %v898_v17 = vmul.f32 %v880_v59, %v880_v59  ;;  %v895_v62 = vmul.f32 %v888_v60, %v1978_v5  ;;  %v904_v34 = vsub.f32 %v1955_v37, %v880_v59  ;;  %v1361_v59 = vld [vmem:[%s2099_s6] sm:$0xff] }
 0x5c8   : > { %v1460_v60 = vld [vmem:[%s2098_s5] ss:$0 sm:$0xff] }
 0x5c9   : > { %v901_v63 = vsub.f32 %v895_v62, %v898_v17 }
 0x5cb   : > { %v907_v1 = vadd.f32 1e-05, %v901_v63 }
 0x5cc   : > { %v869_v4 = vpop.xlane.xlu1 %868 }
 0x5cd   : > { %1487 = vrsqrt.f32 %v907_v1  ;;  %v881_v6 = vmul.f32 %v1978_v5, %v869_v4  ;;  %vm916_vm6 = vweird.f32 %v907_v1 }
 0x5ce   : > { %v891_v7 = vpop.xlane.xlu0 %890 }
 0x5cf   : > { %v899_v8 = vmul.f32 %v881_v6, %v881_v6  ;;  %v896_v9 = vmul.f32 %v891_v7, %v1978_v5  ;;  %v905_v40 = vsub.f32 %v1963_v44, %v881_v6 }
 0x5d1   : > { %v902_v10 = vsub.f32 %v896_v9, %v899_v8 }
 0x5d3   : > { %v1488_v11 = vpop.eup %1487  ;;  %v908_v13 = vadd.f32 1e-05, %v902_v10 }
 0x5d4   : > { %v911_v14 = vmul.f32 %v1488_v11, %v907_v1  ;;  %vm917_vm5 = vweird.f32 %v1488_v11 }
 0x5d5   : > { %1489 = vrsqrt.f32 %v908_v13  ;;  %vm918_vm7 = vmor %vm916_vm6, %vm917_vm5  ;;  %vm926_vm9 = vweird.f32 %v908_v13 }
 0x5d6   : > { %v912_v15 = vmul.f32 %v1488_v11, %v911_v14 }
 0x5d7   : > { %v872_v16 = vpop.xlane.xlu0 %871 }
 0x5d8   : > { %v913_v18 = vmul.f32 0.5, %v912_v15  ;;  %v882_v19 = vmul.f32 %v1978_v5, %v872_v16 }
 0x5d9   : > { %v894_v20 = vpop.xlane.xlu2 %893 }
 0x5da   : > { %v914_v21 = vsub.f32 1.5, %v913_v18  ;;  %v900_v23 = vmul.f32 %v882_v19, %v882_v19  ;;  %v897_v24 = vmul.f32 %v894_v20, %v1978_v5  ;;  %v906_v12 = vsub.f32 %v1971_v50, %v882_v19  ;;  %v1363_v50 = vld [vmem:[%s2099_s6 + $0x10] sm:$0xff] }
 0x5db   : > { %v1490_v25 = vpop.eup %1489  ;;  %1057 = vmatpush.bf16.msra.mxu1 %v1363_v50 }
 0x5dc   : > { %v915_v26 = vmul.f32 %v1488_v11, %v914_v21  ;;  %v921_v27 = vmul.f32 %v1490_v25, %v908_v13  ;;  %v903_v28 = vsub.f32 %v897_v24, %v900_v23  ;;  %vm927_vm8 = vweird.f32 %v1490_v25 }
 0x5dd   : > { %vm928_vm10 = vmor %vm926_vm9, %vm927_vm8 }
 0x5de   : > { %v922_v29 = vmul.f32 %v1490_v25, %v921_v27  ;;  %v909_v30 = vadd.f32 1e-05, %v903_v28  ;;  %v919_v31 = vsel %vm918_vm7, %v1488_v11, %v915_v26 }
 0x5df   : > { %v940_v38 = vmul.f32 %v919_v31, %v904_v34  ;;  %1058 = vmatpush.bf16.msra.mxu1 %v1362_v58 }
 0x5e0   : > { %v923_v33 = vmul.f32 0.5, %v922_v29  ;;  %1491 = vrsqrt.f32 %v909_v30  ;;  %vm936_vm12 = vweird.f32 %v909_v30 }
 0x5e1   : > { %v944_v43 = vmul.f32 %v943_v36, %v940_v38 }
 0x5e2   : > { %v924_v35 = vsub.f32 1.5, %v923_v33 }
 0x5e3   : > { %v1990_v49 = vadd.f32 %v947_v46, %v944_v43  ;;  %1059 = vmatpush.bf16.msra.mxu1 %v1361_v59 }
 0x5e4   : > { %v925_v39 = vmul.f32 %v1490_v25, %v924_v35 }
 0x5e6   : > { %v1492_v41 = vpop.eup %1491  ;;  %v929_v42 = vsel %vm928_vm10, %v1490_v25, %v925_v39 }
 0x5e7   : > { %v941_v2 = vmul.f32 %v929_v42, %v905_v40  ;;  %v931_v45 = vmul.f32 %v1492_v41, %v909_v30  ;;  %vm937_vm11 = vweird.f32 %v1492_v41  ;;  %v1073_v40 = vperm.slane %v1951_v32, 1 }
 0x5e8   : > { %vm938_vm13 = vmor %vm936_vm12, %vm937_vm11 }
 0x5e9   : > { %v945_v47 = vmul.f32 %v943_v36, %v941_v2  ;;  %v932_v48 = vmul.f32 %v1492_v41, %v931_v45 }
 0x5eb   : > { %v933_v37 = vmul.f32 0.5, %v932_v48  ;;  %v1992_v3 = vadd.f32 %v947_v46, %v945_v47 }
 0x5ed   : > { %v934_v51 = vsub.f32 1.5, %v933_v37  ;;  %v951_v44 = vpack.c.bf16 %v1992_v3, %v1990_v49 }
 0x5ef   : > { %v935_v52 = vmul.f32 %v1492_v41, %v934_v51  ;;  %1334 = vmatmul.msk.bf16.vlgmr.msrb.gmra.mxu0 %vm412_vm0, %v951_v44 }
 0x5f1   : > { %v939_v22 = vsel %vm938_vm13, %v1492_v41, %v935_v52 }
 0x5f2   : > { %v942_v53 = vmul.f32 %v939_v22, %v906_v12 }
 0x5f4   : > { %v946_v54 = vmul.f32 %v943_v36, %v942_v53 }
 0x5f6   : > { %v1998_v55 = vadd.f32 %v947_v46, %v946_v54 }
 0x5f8   : > { %v952_v56 = vpack.c.bf16 %v1998_v55, %v1998_v55 }
 0x5ff   : > { %1335 = vmatmul.msk.bf16.gmra.mxu0 %vm412_vm0, %v952_v56 }
 0x66c   : > { %v983_v61 = vpop.f32.mrf.mxu0 }
 0x66d   : > { %v984_v17 = vadd.f32 %v1460_v60, %v983_v61 }
 0x66f   : > { %v995_v62 = vmul.f32 0.044715, %v984_v17  ;;  %v992_v27 = vmul.f32 0.5, %v984_v17 }
 0x671   : > { %v998_v63 = vmul.f32 %v995_v62, %v984_v17 }
 0x673   : > { %v1001_v0 = vmul.f32 %v998_v63, %v984_v17 }
 0x674   : > { %v985_v1 = vpop.f32.mrf.mxu0 }
 0x675   : > { %v1004_v4 = vadd.f32 %v1001_v0, %v984_v17  ;;  %v986_v6 = vadd.f32 %v1460_v60, %v985_v1 }
 0x677   : > { %v996_v7 = vmul.f32 0.044715, %v986_v6  ;;  %v1007_v8 = vmul.f32 0.7978846, %v1004_v4  ;;  %v993_v28 = vmul.f32 0.5, %v986_v6 }
 0x679   : > { %v999_v9 = vmul.f32 %v996_v7, %v986_v6  ;;  %1493 = vtanh.f32 %v1007_v8 }
 0x67b   : > { %v1002_v10 = vmul.f32 %v999_v9, %v986_v6 }
 0x67c   : > { %v988_v11 = vpop.f32.mrf.mxu0 }
 0x67d   : > { %v1005_v13 = vadd.f32 %v1002_v10, %v986_v6  ;;  %v989_v14 = vadd.f32 %v1460_v60, %v988_v11 }
 0x67f   : > { %v1008_v15 = vmul.f32 0.7978846, %v1005_v13  ;;  %v997_v16 = vmul.f32 0.044715, %v989_v14  ;;  %v1494_v19 = vpop.eup %1493  ;;  %v994_v36 = vmul.f32 0.5, %v989_v14 }
 0x680   : > { %v1013_v24 = vadd.f32 1.0, %v1494_v19 }
 0x681   : > { %1495 = vtanh.f32 %v1008_v15  ;;  %v1000_v18 = vmul.f32 %v997_v16, %v989_v14 }
 0x682   : > { %v1016_v30 = vmul.f32 %v1013_v24, %v992_v27 }
 0x683   : > { %v1003_v20 = vmul.f32 %v1000_v18, %v989_v14 }
 0x684   : > { %v990_v21 = vpop.f32.mrf.mxu0 }
 0x685   : > { %v1006_v23 = vadd.f32 %v1003_v20, %v989_v14 }
 0x687   : > { %v1496_v25 = vpop.eup %1495  ;;  %v1009_v26 = vmul.f32 0.7978846, %v1006_v23 }
 0x688   : > { %v1014_v29 = vadd.f32 1.0, %v1496_v25 }
 0x689   : > { %1497 = vtanh.f32 %v1009_v26  ;;  %v1149_v26 = vperm.slane %v1951_v32, 4 }
 0x68a   : > { %v1017_v31 = vmul.f32 %v1014_v29, %v993_v28 }
 0x68c   : > { %v1019_v33 = vpack.c.bf16 %v1017_v31, %v1016_v30 }
 0x68e   : > { %1352 = vmatmul.msk.bf16.vlgmr.msra.gmra.mxu1 %vm1045_vm14, %v1019_v33 }
 0x68f   : > { %v1498_v34 = vpop.eup %1497 }
 0x690   : > { %v1015_v35 = vadd.f32 1.0, %v1498_v34 }
 0x692   : > { %v1018_v38 = vmul.f32 %v1015_v35, %v994_v36 }
 0x694   : > { %v1020_v39 = vpack.c.bf16 %v1018_v38, %v1018_v38 }
 0x69e   : > { %1353 = vmatmul.msk.bf16.gmra.mxu1 %vm1045_vm14, %v1020_v39 }
 0x70b   : > { %v1061_v41 = vpop.f32.mrf.mxu1 }
 0x70c   : > { %v1070_v42 = vadd.f32 %v1061_v41, %v1990_v49 }
 0x70e   : > { %v2020_v43 = vadd.f32 %v1073_v40, %v1070_v42 }
 0x710   : > { %v1077_v2 = vsel %vm412_vm0, %v2020_v43, 0.0  ;;  %v1089_v47 = vmul.f32 %v2020_v43, %v2020_v43 }
 0x711   : > { %1078 = vadd.xlane.f32.xlu1 %v1077_v2 }
 0x712   : > { %v1092_v37 = vsel %vm412_vm0, %v1089_v47, 0.0 }
 0x713   : > { %v1063_v45 = vpop.f32.mrf.mxu1 }
 0x714   : > { %v1071_v46 = vadd.f32 %v1063_v45, %v1992_v3 }
 0x716   : > { %v2027_v48 = vadd.f32 %v1073_v40, %v1071_v46 }
 0x718   : > { %v1080_v51 = vsel %vm412_vm0, %v2027_v48, 0.0  ;;  %v1090_v52 = vmul.f32 %v2027_v48, %v2027_v48 }
 0x719   : > { %1093 = vadd.xlane.f32.xlu1 %v1092_v37  ;;  %1081 = vadd.xlane.f32.xlu0 %v1080_v51 }
 0x71a   : > { %v1095_v3 = vsel %vm412_vm0, %v1090_v52, 0.0 }
 0x71b   : > { %v1066_v49 = vpop.f32.mrf.mxu1 }
 0x71c   : > { %v1072_v44 = vadd.f32 %v1066_v49, %v1998_v55 }
 0x71e   : > { %v2035_v12 = vadd.f32 %v1073_v40, %v1072_v44 }
 0x720   : > { %v1083_v22 = vsel %vm412_vm0, %v2035_v12, 0.0  ;;  %v1091_v54 = vmul.f32 %v2035_v12, %v2035_v12 }
 0x721   : > { %1096 = vadd.xlane.f32.xlu0 %v1095_v3  ;;  %1084 = vadd.xlane.f32.xlu2 %v1083_v22 }
 0x722   : > { %v1098_v56 = vsel %vm412_vm0, %v1091_v54, 0.0 }
 0x723   : > { %v1068_v53 = vpop.f32.mrf.mxu1 }
 0x729   : > { %1099 = vadd.xlane.f32.xlu2 %v1098_v56 }
 0x784   : > { %v1079_v55 = vpop.xlane.xlu1 %1078 }
 0x785   : > { %v1086_v57 = vmul.f32 %v1079_v55, %v1978_v5 }
 0x787   : > { %v1104_v59 = vmul.f32 %v1086_v57, %v1086_v57  ;;  %v1110_v25 = vsub.f32 %v2020_v43, %v1086_v57 }
 0x78c   : > { %v1094_v50 = vpop.xlane.xlu1 %1093  ;;  %v1082_v58 = vpop.xlane.xlu0 %1081 }
 0x78d   : > { %v1101_v60 = vmul.f32 %v1094_v50, %v1978_v5  ;;  %v1087_v62 = vmul.f32 %v1082_v58, %v1978_v5 }
 0x78f   : > { %v1107_v61 = vsub.f32 %v1101_v60, %v1104_v59  ;;  %v1105_v1 = vmul.f32 %v1087_v62, %v1087_v62  ;;  %v1111_v39 = vsub.f32 %v2027_v48, %v1087_v62 }
 0x791   : > { %v1113_v17 = vadd.f32 1e-05, %v1107_v61 }
 0x793   : > { %1499 = vrsqrt.f32 %v1113_v17  ;;  %vm1122_vm1 = vweird.f32 %v1113_v17 }
 0x794   : > { %v1085_v63 = vpop.xlane.xlu2 %1084  ;;  %v1097_v0 = vpop.xlane.xlu0 %1096 }
 0x795   : > { %v1102_v4 = vmul.f32 %v1097_v0, %v1978_v5  ;;  %v1088_v8 = vmul.f32 %v1085_v63, %v1978_v5 }
 0x797   : > { %v1108_v6 = vsub.f32 %v1102_v4, %v1105_v1  ;;  %v1106_v14 = vmul.f32 %v1088_v8, %v1088_v8  ;;  %v1112_v47 = vsub.f32 %v2035_v12, %v1088_v8 }
 0x799   : > { %v1500_v7 = vpop.eup %1499  ;;  %v1114_v9 = vadd.f32 1e-05, %v1108_v6 }
 0x79a   : > { %v1117_v10 = vmul.f32 %v1500_v7, %v1113_v17  ;;  %vm1123_vm15 = vweird.f32 %v1500_v7 }
 0x79b   : > { %1501 = vrsqrt.f32 %v1114_v9  ;;  %vm1124_vm2 = vmor %vm1122_vm1, %vm1123_vm15  ;;  %vm1132_vm4 = vweird.f32 %v1114_v9 }
 0x79c   : > { %v1118_v11 = vmul.f32 %v1500_v7, %v1117_v10  ;;  %v1100_v13 = vpop.xlane.xlu2 %1099 }
 0x79d   : > { %v1103_v15 = vmul.f32 %v1100_v13, %v1978_v5  ;;  %v1153_v5 = vperm.slane %v1951_v32, 5 }
 0x79e   : > { %v1119_v16 = vmul.f32 0.5, %v1118_v11 }
 0x79f   : > { %v1109_v18 = vsub.f32 %v1103_v15, %v1106_v14 }
 0x7a0   : > { %v1120_v19 = vsub.f32 1.5, %v1119_v16 }
 0x7a1   : > { %v1502_v20 = vpop.eup %1501  ;;  %v1115_v21 = vadd.f32 1e-05, %v1109_v18 }
 0x7a2   : > { %v1121_v23 = vmul.f32 %v1500_v7, %v1120_v19  ;;  %v1127_v24 = vmul.f32 %v1502_v20, %v1114_v9  ;;  %vm1133_vm3 = vweird.f32 %v1502_v20 }
 0x7a3   : > { %1503 = vrsqrt.f32 %v1115_v21  ;;  %vm1134_vm5 = vmor %vm1132_vm4, %vm1133_vm3  ;;  %vm1142_vm7 = vweird.f32 %v1115_v21 }
 0x7a4   : > { %v1125_v27 = vsel %vm1124_vm2, %v1500_v7, %v1121_v23  ;;  %v1128_v28 = vmul.f32 %v1502_v20, %v1127_v24 }
 0x7a5   : > { %v1146_v29 = vmul.f32 %v1125_v27, %v1110_v25 }
 0x7a6   : > { %v1129_v30 = vmul.f32 0.5, %v1128_v28 }
 0x7a7   : > { %v1150_v31 = vmul.f32 %v1149_v26, %v1146_v29 }
 0x7a8   : > { %v1130_v33 = vsub.f32 1.5, %v1129_v30 }
 0x7a9   : > { %v1504_v34 = vpop.eup %1503  ;;  %v1154_v35 = vadd.f32 %v1153_v5, %v1150_v31 }
 0x7aa   : > { %v1131_v36 = vmul.f32 %v1502_v20, %v1130_v33  ;;  %v1137_v38 = vmul.f32 %v1504_v34, %v1115_v21  ;;  %vm1143_vm6 = vweird.f32 %v1504_v34 }
 0x7ab   : > { %1157 = vst.msk [vmem:[%s364_s10] sm:$0xff] %vm412_vm0, %v1154_v35  ;;  %vm1144_vm8 = vmor %vm1142_vm7, %vm1143_vm6 }
 0x7ac   : > { %v1135_v40 = vsel %vm1134_vm5, %v1502_v20, %v1131_v36  ;;  %v1138_v41 = vmul.f32 %v1504_v34, %v1137_v38 }
 0x7ad   : > { %v1147_v32 = vmul.f32 %v1135_v40, %v1111_v39 }
 0x7ae   : > { %v1139_v42 = vmul.f32 0.5, %v1138_v41 }
 0x7af   : > { %v1151_v43 = vmul.f32 %v1149_v26, %v1147_v32 }
 0x7b0   : > { %v1140_v2 = vsub.f32 1.5, %v1139_v42 }
 0x7b1   : > { %v1155_v45 = vadd.f32 %v1153_v5, %v1151_v43 }
 0x7b2   : > { %v1141_v46 = vmul.f32 %v1504_v34, %v1140_v2 }
 0x7b3   : > { %1158 = vst.msk [vmem:[%s364_s10 + $0x8] sm:$0xff] %vm412_vm0, %v1155_v45 }
 0x7b4   : > { %v1145_v48 = vsel %vm1144_vm8, %v1504_v34, %v1141_v46 }
 0x7b5   : > { %v1148_v37 = vmul.f32 %v1145_v48, %v1112_v47 }
 0x7b7   : > { %v1152_v51 = vmul.f32 %v1149_v26, %v1148_v37 }
 0x7b9   : > { %v1156_v49 = vadd.f32 %v1153_v5, %v1152_v51 }
 0x7bb   : > { %1159 = vst.msk [vmem:[%s364_s10 + $0x10] sm:$0xff] %vm412_vm0, %v1156_v49 }
 0x7bc   : > { %1652 = shalt.err (!%p1649_p8)
}
 0x7bd   : > { %s1713_s17 = smov 128   ;;  %s1714_s23 = smov 8  }
 0x7be   : > { %1385 = dma.vmem_to_hbm [thread:$0]  (%p1798_p5), %s1174_s9, 384, %s1176_s21, %s1161_s22, %s1713_s17, %s1713_s17, %s1714_s23  }
 0x7bf PF: > { %p1412_p9 = scmp.ge.s32.totalorder %s1699_s30, 2  ;;  %s1190_s24 = sand.u32 1, %s1687_s27  }
 0x7c0   : > { %s1191_s10 = scalar_lea.sflag [#allocation4], %s1190_s24 }
 0x7c1   : > { %p1401_p10 = pnand %p1412_p9, %p1802_p6 }
 0x7c3   : > { %p1402_p11 = pneg %p1401_p10 }
 0x7c5   : > { %1682 = dma.done.wait (%p1402_p11), %s1191_s10, 384  }
 0x7c6   : > { %1684 = vsyncadd (%p1402_p11), %s1191_s10, 4294966912  ;;  %s2113_s12 = sld [smem:[#allocation15_spill]]  ;;  %p21_p12 = scmp.ge.s32.totalorder %s1785_s11, 4  }
 0x7c7   : > { %s2114_s29 = sld [smem:[#allocation16_spill]]  ;;  %s2115_s27 = smov %s1691_s28 }
 0x7c8   : > { %s2117_s30 = smov %s1785_s11  ;;  %23 = sbr.rel (!%p21_p12) target bundleno = 9 (0x9), region = 105 }
 0x7cc   : > { %s2116_s28 = smov %s2113_s12 }
 0x7cd   :  { %1197 = vsyncpa [#allocation3], 1 }
 0x7ce   :  { %1199 = vsyncpa [#allocation3 + $0x1], 1 }
 0x7cf   :  { %1200 = vsyncpa [#allocation6], 1 }
 0x7d0   :  { %1201 = vsyncpa [#allocation9], 1 }
 0x7d1   :  { %1202 = vsyncpa [#allocation4], 1 }
 0x7d2   :  { %1204 = vsyncpa [#allocation4 + $0x1], 1 }

</bundles_post_ra>
